<compile_context>
chip_gen: v6e
topology: v6e:2x2x1
jax: 0.10.0
libtpu: 0.0.40
codegen_flags: <defaults>
</compile_context>

<pallas_src>
import math

import jax
import jax.numpy as jnp
from jax.experimental import pallas as pl
from jax.experimental.pallas import tpu as pltpu


# ----------------------------------------------------------------------------
# Configuration (synthetic "caffe2 GeneralizedRCNN" net)
# ----------------------------------------------------------------------------
SIZE_DIVISIBILITY = 32
PATCH = 4
HID = 128
NUM_CLASSES = 8
NUM_DET = 8

CIN = 3 * PATCH * PATCH        # 48 patch features; no K zero-padding
NOUT_T = 16                    # fused head rows: cls(8) + box(4) + zero-pad(4)
DET_W = 8                      # output rows: [score, class, x0, y0, x1, y1, 0, 0]
MAX_TM = 2048                  # cap on locations per grid step

PIXEL_MEAN = jnp.array([103.53, 116.28, 123.675], jnp.float32)
PIXEL_STD = jnp.array([57.375, 57.12, 58.395], jnp.float32)


# ----------------------------------------------------------------------------
# Pallas kernel: fused detection head + epilogue (feature-major / transposed)
#   h^T   = relu(W1'^T x^T + b1'^T)        (normalization folded into W1'/b1')
#   out^T = Wout^T h^T                     (rows 0:8 cls logits, 8:12 box deltas)
#   score = sigmoid(max logit), class = argmax, box = anchor + delta*PATCH, clip
# ----------------------------------------------------------------------------
def head_kernel(meta_ref, x_ref, w1t_ref, b1t_ref, woutt_ref, det_ref):
    # meta_ref : SMEM (4,) int32   [gx, W0, H0, pad]   (scalar prefetch)
    # x_ref    : (CIN, TM)     bf16  mean-padded patch pixels, locations on lanes
    # w1t_ref  : (HID, CIN)    bf16  normalization-folded first layer, transposed
    # b1t_ref  : (HID, 1)      f32
    # woutt_ref: (NOUT_T, HID) bf16  rows [cls(8) | box(4) | zero-pad(4)]
    # det_ref  : (DET_W, TM)   f32   rows [score, class, x0, y0, x1, y1, 0, 0]
    tm = det_ref.shape[1]

    h = jnp.dot(w1t_ref[...], x_ref[...],
                preferred_element_type=jnp.float32)             # (HID, TM), K=48
    h = jnp.maximum(h + b1t_ref[...], 0.0)
    out = jnp.dot(woutt_ref[...], h.astype(jnp.bfloat16),
                  preferred_element_type=jnp.float32)           # (NOUT_T, TM)

    logits = out[:NUM_CLASSES, :]                               # (8, TM)
    deltas = out[NUM_CLASSES:NUM_CLASSES + 4, :]                # (4, TM)

    # max/argmax on raw logits (sigmoid is monotone); first-index tie-break.
    best = jnp.max(logits, axis=0, keepdims=True)               # (1, TM)
    ids = jax.lax.broadcasted_iota(jnp.int32, logits.shape, 0)
    cls_i = jnp.min(jnp.where(logits >= best, ids, jnp.int32(NUM_CLASSES)),
                    axis=0, keepdims=True)
    score = jax.nn.sigmoid(best)                                # 1 EUP op / loc
    cls_f = cls_i.astype(jnp.float32)

    # Fused box decode: anchor from flat location index, clip to real image size.
    gx = meta_ref[0].astype(jnp.float32)
    w0 = meta_ref[1].astype(jnp.float32)
    h0 = meta_ref[2].astype(jnp.float32)
    lane = jax.lax.broadcasted_iota(jnp.int32, (1, tm), 1)
    l_abs = (pl.program_id(0) * tm + lane).astype(jnp.float32)  # (1, TM)
    # floor((l + 0.5)/gx) == l // gx exactly for practical grid sizes (<~10^3).
    iy = jnp.floor((l_abs + 0.5) / gx)
    ix = l_abs - iy * gx
    x0 = jnp.clip(ix * PATCH + deltas[0:1, :] * PATCH, 0.0, w0)
    y0 = jnp.clip(iy * PATCH + deltas[1:2, :] * PATCH, 0.0, h0)
    x1 = jnp.clip((ix + 1.0) * PATCH + deltas[2:3, :] * PATCH, 0.0, w0)
    y1 = jnp.clip((iy + 1.0) * PATCH + deltas[3:4, :] * PATCH, 0.0, h0)

    # Lane-dense row writes (locations on the 128-lane axis; no narrow concat).
    det_ref[0:1, :] = score
    det_ref[1:2, :] = cls_f
    det_ref[2:3, :] = x0
    det_ref[3:4, :] = y0
    det_ref[4:5, :] = x1
    det_ref[5:6, :] = y1
    det_ref[6:8, :] = jnp.zeros((2, tm), jnp.float32)


def choose_tile(n_loc, max_tm=MAX_TM):
    """Tile size: multiple of 128 (lane-dense output), >= 2 grid steps when
    possible (v7x megacore split), capped at MAX_TM."""
    tm = pl.cdiv(pl.cdiv(n_loc, 2), 128) * 128
    return int(max(128, min(max_tm, tm)))


def detection_head(x_t, meta, w1t, b1t, woutt, tm):
    cin, l_pad = x_t.shape
    hid = w1t.shape[0]
    noutt = woutt.shape[0]
    return pl.pallas_call(
        head_kernel,
        out_shape=jax.ShapeDtypeStruct((DET_W, l_pad), jnp.float32),
        grid_spec=pltpu.PrefetchScalarGridSpec(
            num_scalar_prefetch=1,
            grid=(l_pad // tm,),
            in_specs=[
                pl.BlockSpec((cin, tm), lambda i, meta_ref: (0, i)),
                pl.BlockSpec((hid, cin), lambda i, meta_ref: (0, 0)),   # resident
                pl.BlockSpec((hid, 1), lambda i, meta_ref: (0, 0)),     # resident
                pl.BlockSpec((noutt, hid), lambda i, meta_ref: (0, 0)), # resident
            ],
            out_specs=pl.BlockSpec((DET_W, tm), lambda i, meta_ref: (0, i)),
        ),
        compiler_params=pltpu.CompilerParams(
            dimension_semantics=("parallel",)),
    )(meta, x_t, w1t, b1t, woutt)


# ----------------------------------------------------------------------------
# Parameters + normalization fold / packing
# ----------------------------------------------------------------------------
def make_params(key):
    k1, k2, k3, k4 = jax.random.split(key, 4)
    w1 = jax.random.normal(k1, (CIN, HID), jnp.float32) * 0.05
    b1 = jax.random.normal(k2, (1, HID), jnp.float32) * 0.01
    wcls = jax.random.normal(k3, (HID, NUM_CLASSES), jnp.float32) * 0.05
    wbox = jax.random.normal(k4, (HID, 4), jnp.float32) * 0.05
    return w1, b1, wcls, wbox


def fold_and_pack_params(params, pixel_mean, pixel_std):
    """Fold (x - mean)/std into W1/b1 and pre-transpose everything into the
    feature-major layout the kernel uses.  K stays at 48 (no zero padding)."""
    w1, b1, wcls, wbox = params
    pp = PATCH * PATCH
    # feature layout is (c, py, px) with channel outermost -> repeat per channel
    inv_std = jnp.repeat(1.0 / pixel_std, pp)          # (48,)
    mean = jnp.repeat(pixel_mean, pp)                  # (48,)

    w1_fold = w1 * inv_std[:, None]                    # (48, HID)
    b1_fold = b1 - mean[None, :] @ w1_fold             # (1, HID)

    woutt = jnp.zeros((NOUT_T, HID), jnp.float32)
    woutt = woutt.at[:NUM_CLASSES, :].set(wcls.T)
    woutt = woutt.at[NUM_CLASSES:NUM_CLASSES + 4, :].set(wbox.T)

    return (w1_fold.T.astype(jnp.bfloat16),            # (HID, 48)  bf16
            b1_fold.T,                                  # (HID, 1)   f32
            woutt.astype(jnp.bfloat16))                 # (16, HID)  bf16


# ----------------------------------------------------------------------------
# Full forward (mirrors ProtobufDetectionModel.forward)
# ----------------------------------------------------------------------------
def forward(batched_inputs, packed_params):
    w1t, b1t, woutt = packed_params
    inp = batched_inputs[0]
    image = inp["image"]                              # (3, H0, W0), single image
    _, H0, W0 = image.shape

    # --- convert_batched_inputs_to_c2_format: pad to size_divisibility -------
    Hp = int(math.ceil(H0 / SIZE_DIVISIBILITY) * SIZE_DIVISIBILITY)
    Wp = int(math.ceil(W0 / SIZE_DIVISIBILITY) * SIZE_DIVISIBILITY)
    # Pad with the per-channel mean so that after the *folded* normalization the
    # border contributes exactly 0 (== detectron2's normalize-then-zero-pad).
    canvas = jnp.broadcast_to(PIXEL_MEAN[:, None, None], (3, Hp, Wp))
    data = jax.lax.dynamic_update_slice(canvas, image, (0, 0, 0))   # (3, Hp, Wp)
    im_info = jnp.array([[H0, W0, 1.0]], jnp.float32)               # (N, 3)

    # --- patch extraction (space-to-depth), feature-major, bf16 before pad ---
    gy, gx = Hp // PATCH, Wp // PATCH
    L = gy * gx
    patches = data.reshape(3, gy, PATCH, gx, PATCH).transpose(0, 2, 4, 1, 3)
    patches = patches.reshape(CIN, L).astype(jnp.bfloat16)          # (48, L)

    tm = choose_tile(L)
    L_pad = pl.cdiv(L, tm) * tm
    x_t = jnp.pad(patches, ((0, 0), (0, L_pad - L)))                # (48, L_pad)

    # --- synthetic "caffe2 GeneralizedRCNN" net: fused Pallas head -----------
    meta = jnp.array([gx, W0, H0, 0], jnp.int32)
    det = detection_head(x_t, meta, w1t, b1t, woutt, tm)            # (8, L_pad)
    det = det[:, :L]                      # drop padded locations (garbage rows)

    per_loc_score = det[0]                # sigmoid(max logit)          (L,)
    per_loc_class = det[1]                # argmax class (as float)     (L,)
    boxes_t = det[2:6]                    # decoded + clipped boxes     (4, L)

    # --- top-k selection (stands in for BoxWithNMSLimit) ---------------------
    top_score, top_idx = jax.lax.top_k(per_loc_score, NUM_DET)
    bbox_nms = boxes_t[:, top_idx].T                  # (NUM_DET, 4)
    score_nms = top_score                             # (NUM_DET,)
    class_nms = per_loc_class[top_idx].astype(jnp.int32)

    # --- assemble_rcnn_outputs_by_name + detector_postprocess ----------------
    out_h = float(inp.get("height", H0))
    out_w = float(inp.get("width", W0))
    scale_x = out_w / float(W0)
    scale_y = out_h / float(H0)
    scaled = jnp.stack(
        [jnp.clip(bbox_nms[:, 0] * scale_x, 0.0, out_w),
         jnp.clip(bbox_nms[:, 1] * scale_y, 0.0, out_h),
         jnp.clip(bbox_nms[:, 2] * scale_x, 0.0, out_w),
         jnp.clip(bbox_nms[:, 3] * scale_y, 0.0, out_h)], axis=-1)

    # pred_classes would be int64 in torch; JAX default integer is int32.
    instances = {
        "pred_boxes": scaled,
        "scores": score_nms,
        "pred_classes": class_nms,
        "image_size": (out_h, out_w),
    }
    del im_info  # retained above only to mirror the c2_inputs construction
    return [{"instances": instances}]


if __name__ == "__main__":
    key = jax.random.PRNGKey(0)
    k_img, k_par = jax.random.split(key)
    # un-padded size (120, 156), padded to (128, 160) -> L = 32*40 = 1280,
    # tile = 640 -> 2 grid steps (exercises the pipelined / megacore path).
    image = jax.random.uniform(k_img, (3, 120, 156), jnp.float32) * 255.0
    batched_inputs = [{"image": image, "height": 240, "width": 312}]

    params = make_params(k_par)
    packed = fold_and_pack_params(params, PIXEL_MEAN, PIXEL_STD)

    results = forward(batched_inputs, packed)
    inst = results[0]["instances"]
    jax.block_until_ready(inst["pred_boxes"])
    jax.block_until_ready(inst["scores"])
    jax.block_until_ready(inst["pred_classes"])
    assert inst["pred_boxes"].shape == (NUM_DET, 4)
    assert inst["scores"].shape == (NUM_DET,)
    assert inst["pred_classes"].shape == (NUM_DET,)
    assert bool(jnp.all(jnp.isfinite(inst["pred_boxes"])))
    assert bool(jnp.all((inst["pred_classes"] >= 0) & (inst["pred_classes"] < NUM_CLASSES)))
    assert bool(jnp.all((inst["scores"] >= 0.0) & (inst["scores"] <= 1.0)))
    print("KERNEL_OK")
</pallas_src>

<mosaic_0001>
module attributes {stable_mosaic.version = 11 : i64} {
  func.func @head_kernel(%arg0: i32, %arg1: memref<4xi32, #tpu.memory_space<smem>>, %arg2: memref<48x640xbf16, #tpu.memory_space<vmem>>, %arg3: memref<128x48xbf16, #tpu.memory_space<vmem>>, %arg4: memref<128x1xf32, #tpu.memory_space<vmem>>, %arg5: memref<16x128xbf16, #tpu.memory_space<vmem>>, %arg6: memref<8x640xf32, #tpu.memory_space<vmem>>) attributes {dimension_semantics = [#tpu.dimension_semantics<parallel>], iteration_bounds = array<i64: 2>, scalar_prefetch = 1 : i64, scratch_operands = 0 : i64, tpu.core_type = #tpu.core_type<tc>, window_params = [{transform_indices = @transform_0, window_bounds = array<i64: 48, 640>}, {pipeline_mode = #tpu.pipeline_mode<synchronous>, transform_indices = @transform_1, window_bounds = array<i64: 128, 48>}, {pipeline_mode = #tpu.pipeline_mode<synchronous>, transform_indices = @transform_2, window_bounds = array<i64: 128, 1>}, {pipeline_mode = #tpu.pipeline_mode<synchronous>, transform_indices = @transform_3, window_bounds = array<i64: 16, 128>}, {transform_indices = @transform_4, window_bounds = array<i64: 8, 640>}]} {
    %c0 = arith.constant 0 : index
    %c0_0 = arith.constant 0 : index
    %0 = vector.load %arg3[%c0, %c0_0] : memref<128x48xbf16, #tpu.memory_space<vmem>>, vector<128x48xbf16>
    %c0_1 = arith.constant 0 : index
    %c0_2 = arith.constant 0 : index
    %1 = vector.load %arg2[%c0_1, %c0_2] : memref<48x640xbf16, #tpu.memory_space<vmem>>, vector<48x640xbf16>
    %cst = arith.constant dense<0.000000e+00> : vector<128x640xf32>
    %2 = tpu.matmul %0, %1, %cst {dimension_numbers = #tpu.dot_dimension_numbers<[1], [0], [0], [1], [0, 0, 1, 1], [], []>} : vector<128x48xbf16>, vector<48x640xbf16>, vector<128x640xf32> -> vector<128x640xf32>
    %c0_3 = arith.constant 0 : index
    %c0_4 = arith.constant 0 : index
    %3 = vector.load %arg4[%c0_3, %c0_4] : memref<128x1xf32, #tpu.memory_space<vmem>>, vector<128x1xf32>
    %4 = vector.broadcast %3 : vector<128x1xf32> to vector<128x640xf32>
    %5 = arith.addf %2, %4 : vector<128x640xf32>
    %cst_5 = arith.constant 0.000000e+00 : f32
    %6 = vector.broadcast %cst_5 : f32 to vector<128x640xf32>
    %7 = arith.maximumf %5, %6 : vector<128x640xf32>
    %c0_6 = arith.constant 0 : index
    %c0_7 = arith.constant 0 : index
    %8 = vector.load %arg5[%c0_6, %c0_7] : memref<16x128xbf16, #tpu.memory_space<vmem>>, vector<16x128xbf16>
    %9 = arith.truncf %7 : vector<128x640xf32> to vector<128x640xbf16>
    %cst_8 = arith.constant dense<0.000000e+00> : vector<16x640xf32>
    %10 = tpu.matmul %8, %9, %cst_8 {dimension_numbers = #tpu.dot_dimension_numbers<[1], [0], [0], [1], [0, 0, 1, 1], [], []>} : vector<16x128xbf16>, vector<128x640xbf16>, vector<16x640xf32> -> vector<16x640xf32>
    %11 = vector.extract_strided_slice %10 {offsets = [0, 0], sizes = [8, 640], strides = [1, 1]} : vector<16x640xf32> to vector<8x640xf32>
    %12 = vector.extract_strided_slice %10 {offsets = [8, 0], sizes = [4, 640], strides = [1, 1]} : vector<16x640xf32> to vector<4x640xf32>
    %cst_9 = arith.constant dense<0xFF800000> : vector<640xf32>
    %13 = vector.multi_reduction <maximumf>, %11, %cst_9 [0] : vector<8x640xf32> to vector<640xf32>
    %14 = vector.shape_cast %13 : vector<640xf32> to vector<1x640xf32>
    %15 = tpu.iota {dimensions = array<i32: 0>} : vector<8x640xi32>
    %16 = vector.broadcast %14 : vector<1x640xf32> to vector<8x640xf32>
    %17 = arith.cmpf oge, %11, %16 : vector<8x640xf32>
    %c8_i32 = arith.constant 8 : i32
    %18 = vector.broadcast %c8_i32 : i32 to vector<8x640xi32>
    %19 = arith.select %17, %15, %18 : vector<8x640xi1>, vector<8x640xi32>
    %cst_10 = arith.constant dense<2147483647> : vector<640xi32>
    %20 = vector.multi_reduction <minsi>, %19, %cst_10 [0] : vector<8x640xi32> to vector<640xi32>
    %21 = vector.shape_cast %20 : vector<640xi32> to vector<1x640xi32>
    %22 = arith.negf %14 : vector<1x640xf32>
    %23 = math.exp %22 : vector<1x640xf32>
    %cst_11 = arith.constant 1.000000e+00 : f32
    %24 = vector.broadcast %cst_11 : f32 to vector<1x640xf32>
    %25 = arith.addf %24, %23 : vector<1x640xf32>
    %26 = arith.divf %24, %25 : vector<1x640xf32>
    %27 = arith.sitofp %21 : vector<1x640xi32> to vector<1x640xf32>
    %c0_12 = arith.constant 0 : index
    %28 = memref.load %arg1[%c0_12] : memref<4xi32, #tpu.memory_space<smem>>
    %29 = arith.sitofp %28 : i32 to f32
    %c1 = arith.constant 1 : index
    %30 = memref.load %arg1[%c1] : memref<4xi32, #tpu.memory_space<smem>>
    %31 = arith.sitofp %30 : i32 to f32
    %c2 = arith.constant 2 : index
    %32 = memref.load %arg1[%c2] : memref<4xi32, #tpu.memory_space<smem>>
    %33 = arith.sitofp %32 : i32 to f32
    %34 = tpu.iota {dimensions = array<i32: 1>} : vector<1x640xi32>
    %c640_i32 = arith.constant 640 : i32
    %35 = arith.muli %arg0, %c640_i32 : i32
    %36 = vector.broadcast %35 : i32 to vector<1x640xi32>
    %37 = arith.addi %36, %34 : vector<1x640xi32>
    %38 = arith.sitofp %37 : vector<1x640xi32> to vector<1x640xf32>
    %cst_13 = arith.constant 5.000000e-01 : f32
    %39 = vector.broadcast %cst_13 : f32 to vector<1x640xf32>
    %40 = arith.addf %38, %39 : vector<1x640xf32>
    %41 = vector.broadcast %29 : f32 to vector<1x640xf32>
    %42 = arith.divf %40, %41 : vector<1x640xf32>
    %43 = math.floor %42 : vector<1x640xf32>
    %44 = vector.broadcast %29 : f32 to vector<1x640xf32>
    %45 = arith.mulf %43, %44 : vector<1x640xf32>
    %46 = arith.subf %38, %45 : vector<1x640xf32>
    %cst_14 = arith.constant 4.000000e+00 : f32
    %47 = vector.broadcast %cst_14 : f32 to vector<1x640xf32>
    %48 = arith.mulf %46, %47 : vector<1x640xf32>
    %49 = vector.extract_strided_slice %12 {offsets = [0, 0], sizes = [1, 640], strides = [1, 1]} : vector<4x640xf32> to vector<1x640xf32>
    %cst_15 = arith.constant 4.000000e+00 : f32
    %50 = vector.broadcast %cst_15 : f32 to vector<1x640xf32>
    %51 = arith.mulf %49, %50 : vector<1x640xf32>
    %52 = arith.addf %48, %51 : vector<1x640xf32>
    %cst_16 = arith.constant 0.000000e+00 : f32
    %53 = vector.broadcast %cst_16 : f32 to vector<1x640xf32>
    %54 = arith.maximumf %53, %52 : vector<1x640xf32>
    %55 = vector.broadcast %31 : f32 to vector<1x640xf32>
    %56 = arith.minimumf %55, %54 : vector<1x640xf32>
    %cst_17 = arith.constant 4.000000e+00 : f32
    %57 = vector.broadcast %cst_17 : f32 to vector<1x640xf32>
    %58 = arith.mulf %43, %57 : vector<1x640xf32>
    %59 = vector.extract_strided_slice %12 {offsets = [1, 0], sizes = [1, 640], strides = [1, 1]} : vector<4x640xf32> to vector<1x640xf32>
    %cst_18 = arith.constant 4.000000e+00 : f32
    %60 = vector.broadcast %cst_18 : f32 to vector<1x640xf32>
    %61 = arith.mulf %59, %60 : vector<1x640xf32>
    %62 = arith.addf %58, %61 : vector<1x640xf32>
    %cst_19 = arith.constant 0.000000e+00 : f32
    %63 = vector.broadcast %cst_19 : f32 to vector<1x640xf32>
    %64 = arith.maximumf %63, %62 : vector<1x640xf32>
    %65 = vector.broadcast %33 : f32 to vector<1x640xf32>
    %66 = arith.minimumf %65, %64 : vector<1x640xf32>
    %cst_20 = arith.constant 1.000000e+00 : f32
    %67 = vector.broadcast %cst_20 : f32 to vector<1x640xf32>
    %68 = arith.addf %46, %67 : vector<1x640xf32>
    %cst_21 = arith.constant 4.000000e+00 : f32
    %69 = vector.broadcast %cst_21 : f32 to vector<1x640xf32>
    %70 = arith.mulf %68, %69 : vector<1x640xf32>
    %71 = vector.extract_strided_slice %12 {offsets = [2, 0], sizes = [1, 640], strides = [1, 1]} : vector<4x640xf32> to vector<1x640xf32>
    %cst_22 = arith.constant 4.000000e+00 : f32
    %72 = vector.broadcast %cst_22 : f32 to vector<1x640xf32>
    %73 = arith.mulf %71, %72 : vector<1x640xf32>
    %74 = arith.addf %70, %73 : vector<1x640xf32>
    %cst_23 = arith.constant 0.000000e+00 : f32
    %75 = vector.broadcast %cst_23 : f32 to vector<1x640xf32>
    %76 = arith.maximumf %75, %74 : vector<1x640xf32>
    %77 = vector.broadcast %31 : f32 to vector<1x640xf32>
    %78 = arith.minimumf %77, %76 : vector<1x640xf32>
    %cst_24 = arith.constant 1.000000e+00 : f32
    %79 = vector.broadcast %cst_24 : f32 to vector<1x640xf32>
    %80 = arith.addf %43, %79 : vector<1x640xf32>
    %cst_25 = arith.constant 4.000000e+00 : f32
    %81 = vector.broadcast %cst_25 : f32 to vector<1x640xf32>
    %82 = arith.mulf %80, %81 : vector<1x640xf32>
    %83 = vector.extract_strided_slice %12 {offsets = [3, 0], sizes = [1, 640], strides = [1, 1]} : vector<4x640xf32> to vector<1x640xf32>
    %cst_26 = arith.constant 4.000000e+00 : f32
    %84 = vector.broadcast %cst_26 : f32 to vector<1x640xf32>
    %85 = arith.mulf %83, %84 : vector<1x640xf32>
    %86 = arith.addf %82, %85 : vector<1x640xf32>
    %cst_27 = arith.constant 0.000000e+00 : f32
    %87 = vector.broadcast %cst_27 : f32 to vector<1x640xf32>
    %88 = arith.maximumf %87, %86 : vector<1x640xf32>
    %89 = vector.broadcast %33 : f32 to vector<1x640xf32>
    %90 = arith.minimumf %89, %88 : vector<1x640xf32>
    %c0_28 = arith.constant 0 : index
    %c0_29 = arith.constant 0 : index
    %91 = vector.load %arg6[%c0_28, %c0_29] : memref<8x640xf32, #tpu.memory_space<vmem>>, vector<1x640xf32>
    tpu.vector_store %arg6[%c0_28, %c0_29], %26 {strides = array<i32>} : memref<8x640xf32, #tpu.memory_space<vmem>>, vector<1x640xf32>,
    %c1_30 = arith.constant 1 : index
    %c0_31 = arith.constant 0 : index
    %92 = vector.load %arg6[%c1_30, %c0_31] : memref<8x640xf32, #tpu.memory_space<vmem>>, vector<1x640xf32>
    tpu.vector_store %arg6[%c1_30, %c0_31], %27 {strides = array<i32>} : memref<8x640xf32, #tpu.memory_space<vmem>>, vector<1x640xf32>,
    %c2_32 = arith.constant 2 : index
    %c0_33 = arith.constant 0 : index
    %93 = vector.load %arg6[%c2_32, %c0_33] : memref<8x640xf32, #tpu.memory_space<vmem>>, vector<1x640xf32>
    tpu.vector_store %arg6[%c2_32, %c0_33], %56 {strides = array<i32>} : memref<8x640xf32, #tpu.memory_space<vmem>>, vector<1x640xf32>,
    %c3 = arith.constant 3 : index
    %c0_34 = arith.constant 0 : index
    %94 = vector.load %arg6[%c3, %c0_34] : memref<8x640xf32, #tpu.memory_space<vmem>>, vector<1x640xf32>
    tpu.vector_store %arg6[%c3, %c0_34], %66 {strides = array<i32>} : memref<8x640xf32, #tpu.memory_space<vmem>>, vector<1x640xf32>,
    %c4 = arith.constant 4 : index
    %c0_35 = arith.constant 0 : index
    %95 = vector.load %arg6[%c4, %c0_35] : memref<8x640xf32, #tpu.memory_space<vmem>>, vector<1x640xf32>
    tpu.vector_store %arg6[%c4, %c0_35], %78 {strides = array<i32>} : memref<8x640xf32, #tpu.memory_space<vmem>>, vector<1x640xf32>,
    %c5 = arith.constant 5 : index
    %c0_36 = arith.constant 0 : index
    %96 = vector.load %arg6[%c5, %c0_36] : memref<8x640xf32, #tpu.memory_space<vmem>>, vector<1x640xf32>
    tpu.vector_store %arg6[%c5, %c0_36], %90 {strides = array<i32>} : memref<8x640xf32, #tpu.memory_space<vmem>>, vector<1x640xf32>,
    %cst_37 = arith.constant 0.000000e+00 : f32
    %97 = vector.broadcast %cst_37 : f32 to vector<2x640xf32>
    %c6 = arith.constant 6 : index
    %c0_38 = arith.constant 0 : index
    %98 = vector.load %arg6[%c6, %c0_38] : memref<8x640xf32, #tpu.memory_space<vmem>>, vector<2x640xf32>
    tpu.vector_store %arg6[%c6, %c0_38], %97 {strides = array<i32>} : memref<8x640xf32, #tpu.memory_space<vmem>>, vector<2x640xf32>,
    return
  }
  func.func @transform_0(%arg0: i32, %arg1: memref<4xi32, #tpu.memory_space<smem>>) -> (i32, i32) {
    %c0_i32 = arith.constant 0 : i32
    %c0_i32_0 = arith.constant 0 : i32
    return %c0_i32, %arg0 : i32, i32
  }
  func.func @transform_1(%arg0: i32, %arg1: memref<4xi32, #tpu.memory_space<smem>>) -> (i32, i32) {
    %c0_i32 = arith.constant 0 : i32
    %c0_i32_0 = arith.constant 0 : i32
    %c0_i32_1 = arith.constant 0 : i32
    return %c0_i32, %c0_i32_0 : i32, i32
  }
  func.func @transform_2(%arg0: i32, %arg1: memref<4xi32, #tpu.memory_space<smem>>) -> (i32, i32) {
    %c0_i32 = arith.constant 0 : i32
    %c0_i32_0 = arith.constant 0 : i32
    %c0_i32_1 = arith.constant 0 : i32
    return %c0_i32, %c0_i32_0 : i32, i32
  }
  func.func @transform_3(%arg0: i32, %arg1: memref<4xi32, #tpu.memory_space<smem>>) -> (i32, i32) {
    %c0_i32 = arith.constant 0 : i32
    %c0_i32_0 = arith.constant 0 : i32
    %c0_i32_1 = arith.constant 0 : i32
    return %c0_i32, %c0_i32_0 : i32, i32
  }
  func.func @transform_4(%arg0: i32, %arg1: memref<4xi32, #tpu.memory_space<smem>>) -> (i32, i32) {
    %c0_i32 = arith.constant 0 : i32
    %c0_i32_0 = arith.constant 0 : i32
    return %c0_i32, %arg0 : i32, i32
  }
}

</mosaic_0001>

<bundles_post_ra>
// kernel: tpu_custom_call.1
= control target key start
LH: loop header
LB: loop body
LE: loop exit
PB: predicated region body
PF: predicated region fallthrough
CT: control target
= control target key end

     0   :  { %s2957_s0 = inlined_call_operand.vmem [shape: s32[4], index: 0, kind: input, shape index: {}]   ;;  %s2958_s1 = inlined_call_operand.hbm [shape: bf16[48,1280], index: 1, kind: input, shape index: {}]   ;;  %s2959_s2 = inlined_call_operand.vmem [shape: bf16[128,48], index: 2, kind: input, shape index: {}]   ;;  %s2960_s3 = inlined_call_operand.vmem [shape: f32[128,1], index: 3, kind: input, shape index: {}]   ;;  %s2961_s4 = inlined_call_operand.vmem [shape: bf16[16,128], index: 4, kind: input, shape index: {}]   ;;  %s2962_s5 = inlined_call_operand.hbm [shape: f32[8,1280], index: 5, kind: output, shape index: {}]  }
   0x1   :  { %s10_s20 = sshll.u32 %s2957_s0, 4  ;;  %s11_s20 = int_to_ptr.vmem [resolvable:$true] %s10_s20 }
   0x2   :  { %s1978_s21 = scalar_lea.vmem %s11_s20, 16  ;;  %p1983_p1 = scmp.lt.s32.totalorder %s11_s20, %s11_s20 }
   0x3   :  { %p1979_p0 = scmp.ne.s32.totalorder %s11_s20, %s1978_s21  ;;  %p1984_p2 = scmp.lt.s32.totalorder %s1978_s21, %s1978_s21 }
   0x5   :  { %p1985_p3 = por %p1984_p2, %p1983_p1 }
   0x7   :  { %p1986_p4 = pnand %p1985_p3, %p1979_p0 }
   0x9   :  { %1989 = shalt.err (!%p1986_p4)  }
   0xa   :  { %s2086_s22 = smov [#allocation3]  }
   0xb   :  { %13 = dma.vmem_to_smem %s11_s20, 16, %s2086_s22, [#allocation2] }
   0xc   :  { %2060 = dma.done.wait [#allocation2], 16 }
   0xd   :  { %2061 = vsyncadd [#allocation2], 4294967280 }
   0xe   :  { %15 = sfence }
   0xf   :  { %16 = vsyncpa [#allocation5], 0 }
  0x10   :  { %18 = vsyncpa [#allocation5 + $0x1], 0 }
  0x11   :  { %19 = vsyncpa [#allocation6], 0 }
  0x12   :  { %21 = vsyncpa [#allocation6 + $0x1], 0  ;;  %s2129_s23 = smov 0   ;;  %s2131_s0 = smov 0  }
  0x13   :  { %s2133_s24 = smov 0   ;;  %s2135_s25 = smov 0  }
  0x14 LB: > { %s2150_s26 = sadd.s32 4294967295, %s2084_s25   ;;  %s1730_s27 = sadd.s32 4294967294, %s2084_s25   ;;  %s2084_s25 = sphi %s2135_s25, %s3039_s25   ;;  %s2080_s24 = sphi %s2133_s24, %s3038_s24   ;;  %s2076_s0 = sphi %s2131_s0, %s3037_s0   ;;  %s2072_s23 = sphi %s2129_s23, %s3036_s23  }
  0x15   : > { %s2154_s28 = sadd.s32 1, %s2084_s25   ;;  %s34_s29 = sadd.s32 1, %s2080_s24 }
  0x16   : > { %s31_s30 = ssub.s32 %s2084_s25, %s2154_s28  ;;  %p41_p5 = scmp.ne.s32.totalorder %s2080_s24, %s2076_s0 }
  0x17   : > { %p32_p6 = scmp.eq.s32.totalorder %s31_s30, 0  ;;  %p42_p7 = scmp.eq.s32.totalorder %s2084_s25, 0 }
  0x18   : > { %p47_p8 = scmp.ne.s32.totalorder %s2076_s0, %s2072_s23  ;;  %p48_p9 = scmp.eq.s32.totalorder %s2150_s26, 0 }
  0x19   : > { %s2166_s6 = scalar_select %p32_p6, %s2080_s24, %s34_s29  }
  0x1a   : > { %p43_p10 = por %p42_p7, %p41_p5  ;;  %p2168_p11 = por %p48_p9, %p47_p8 }
  0x1b   : > { %p134_p12 = scmp.eq.s32.totalorder %s2150_s26, 1  ;;  %p140_p13 = scmp.eq.s32.totalorder %s1730_s27, 1 }
  0x1c   : > { %s2975_s7 = scalar_select %p2168_p11, 1, 0 }
  0x1d   : > { %p1882_p1 = scmp.lt.s32.totalorder %s2084_s25, 2  ;;  %p2175_p2 = por %p134_p12, %p41_p5 }
  0x1e   : > { %p2179_p3 = por %p140_p13, %p47_p8  ;;  %s169_s10 = sand.u32 1, %s2080_s24  }
  0x1f   : > { %s2976_s8 = scalar_select %p2175_p2, 1, 0 }
  0x20   : > { %s2977_s9 = scalar_select %p2179_p3, 1, 0 }
  0x21   : > { %s1803_s11 = smul.u32 320, %s2084_s25  ;;  %p2190_p4 = pnand %p1882_p1, %p43_p10 }
  0x22   : > { %s1867_s12 = smul.u32 120, %s169_s10  ;;  %s2197_s19 = scalar_lea.sflag [#allocation5], %s169_s10 }
  0x23   : > { %s2188_s15 = scalar_lea.hbm %s2958_s1, %s1803_s11  ;;  %p1992_p7 = pneg %p2190_p4 }
  0x24   : > { %s173_s17 = scalar_lea.vmem [#allocation4], %s1867_s12  ;;  %s1990_s20 = scalar_lea.hbm %s2188_s15, 1920 }
  0x25   : > { %s180_s18 = sshll.u32 %s173_s17, 4  ;;  %p1991_p6 = scmp.ne.s32.totalorder %s2188_s15, %s1990_s20  ;;  %s2194_s18 = int_to_ptr.vmem [resolvable:$true] %s180_s18 }
  0x26   : > { %s1995_s27 = scalar_lea.hbm %s2958_s1, 3840  ;;  %p1996_p10 = scmp.lt.s32.totalorder %s2188_s15, %s2958_s1 }
  0x27   : > { %p1993_p8 = pnand %p1992_p7, %p1991_p6  ;;  %p1997_p12 = scmp.lt.s32.totalorder %s1995_s27, %s1990_s20 }
  0x29   : > { %p1994_p9 = pneg %p1993_p8  ;;  %p1998_p13 = por %p1997_p12, %p1996_p10 }
  0x2b   : > { %p1999_p1 = pnand %p1998_p13, %p1994_p9 }
  0x2d   : > { %2002 = shalt.err (!%p1999_p1)
}
  0x2e   : > { %s2003_s10 = scalar_lea.vmem %s2194_s18, 1920  ;;  %s2087_s11 = smov [#allocation4]  }
  0x2f   : > { %p2004_p0 = scmp.ne.s32.totalorder %s2194_s18, %s2003_s10  ;;  %s2008_s12 = sshll.u32 %s2087_s11, 4  ;;  %s2009_s12 = int_to_ptr.vmem [resolvable:$false] %s2008_s12 }
  0x30   : > { %s2010_s13 = scalar_lea.vmem %s2009_s12, 3840  ;;  %p2011_p8 = scmp.lt.s32.totalorder %s2194_s18, %s2009_s12 }
  0x31   : > { %p2006_p5 = pnand %p2004_p0, %p1992_p7  ;;  %p2012_p3 = scmp.lt.s32.totalorder %s2010_s13, %s2003_s10 }
  0x33   : > { %p2007_p6 = pneg %p2006_p5  ;;  %p2013_p2 = por %p2012_p3, %p2011_p8 }
  0x35   : > { %p2014_p11 = pnand %p2013_p2, %p2007_p6 }
  0x37   : > { %2017 = shalt.err (!%p2014_p11)
}
  0x38   : > { %s2088_s14 = smov 640   ;;  %s2089_s17 = smov 320  }
  0x39   : > { %s2090_s20 = smov 20   ;;  %p188_p0 = scmp.lt.s32.totalorder %s2084_s25, 3 }
  0x3a   : > { %1877 = dma.hbm_to_vmem [thread:$0]  (!%p2190_p4), %s2188_s15, 1920, %s2194_s18, %s2197_s19, %s2088_s14, %s2089_s17, %s2090_s20  }
  0x3b   : > { %p2979_p5 = scmp.ge.s32.totalorder %s2084_s25, 1 }
  0x3d   : > { %p189_p7 = pnand %p2979_p5, %p188_p0 }
  0x3f   : > { %192 = sbr.rel (%p189_p7) target bundleno = 671 (0x29f), region = 36 }
  0x44   : > { %s2222_s21 = sand.u32 1, %s2076_s0   ;;  %p2980_p11 = scmp.ne.s32.totalorder %s2975_s7, 0 }
  0x45   : > { %s1868_s22 = smul.u32 120, %s2222_s21  ;;  %s195_s27 = scalar_lea.sflag [#allocation5], %s2222_s21 }
  0x47   : > { %s2226_s29 = scalar_lea.vmem [#allocation4], %s1868_s22 }
  0x48   : > { %2063 = dma.done.wait (%p2980_p11), %s195_s27, 1920  }
  0x49   : > { %2065 = vsyncadd (%p2980_p11), %s195_s27, 4294965376  ;;  %v2091_v0 = vmov 0   ;;  %v1926_v1 = vld [vmem:[%s2226_s29 + $0x54] ss:$20 sps:$4 sm:$0xff]   ;;  %v1928_v2 = vld [vmem:[%s2226_s29 + $0x5c] ss:$20 sps:$4 sm:$0xff]  }
  0x4a   : > { %531 = vmatprep.mubr.bf16.mxu0 %v2091_v0  ;;  %644 = vmatprep.mubr.bf16.mxu1 %v2091_v0  ;;  %v1930_v3 = vld [vmem:[%s2226_s29 + $0x50] ss:$20 sps:$4 sm:$0xff]   ;;  %v1931_v4 = vld [vmem:[%s2226_s29 + $0x58] ss:$20 sps:$4 sm:$0xff]   ;;  %v1934_v6 = vld [vmem:[%s2226_s29 + $0x34] ss:$20 sps:$4 sm:$0xff]  }
  0x4b   : > { %1924 = vset.pattern.permute.xlu0 %v2091_v0  ;;  %1925 = vset.pattern.permute.xlu1 %v2091_v0  ;;  %v1932_v5 = vld [vmem:[%s2226_s29 + $0x2c] ss:$20 sps:$4 sm:$0xff]   ;;  %v1936_v7 = vld [vmem:[%s2226_s29 + $0x28] ss:$20 sps:$4 sm:$0xff]   ;;  %v1937_v8 = vld [vmem:[%s2226_s29 + $0x30] ss:$20 sps:$4 sm:$0xff]  }
  0x4c   : > { %509 = vmatprep.subr.bf16.mxu0 %v1926_v1  ;;  %622 = vmatprep.subr.bf16.mxu1 %v1928_v2  ;;  %v1938_v9 = vld [vmem:[%s2226_s29 + $0x4] ss:$20 sps:$4 sm:$0xff]   ;;  %v1940_v10 = vld [vmem:[%s2226_s29 + $0xc] ss:$20 sps:$4 sm:$0xff]   ;;  %v1943_v12 = vld [vmem:[%s2226_s29 + $0x8] ss:$20 sps:$4 sm:$0xff]  }
  0x4d   : > { %510 = vmatpush1.bf16.msra.mxu0 %v1930_v3  ;;  %623 = vmatpush1.bf16.msra.mxu1 %v1931_v4  ;;  %v1942_v11 = vld [vmem:[%s2226_s29] ss:$20 sps:$4 sm:$0xff]   ;;  %vm474_vm0 = vcmask 392192   ;;  %v1953_v20 = vld [vmem:[%s2226_s29 + $0x38] ss:$20 sps:$4 sm:$0xff]   ;;  %s1869_s15 = smul.u32 40, %s2222_s21 }
  0x4e   : > { %511 = vmatprep.subr.bf16.mxu0 %v1932_v5  ;;  %624 = vmatprep.subr.bf16.mxu1 %v1934_v6  ;;  %v2251_v13 = vld [vmem:[%s2959_s2] sm:$0xff]   ;;  %v274_v15 = vld [vmem:[%s2960_s3 + $0x70] sm:$0xff]  ;;  %v2269_v17 = vld [vmem:[%s2959_s2 + $0x8] sm:$0xff]   ;;  %v2965_v46 = vmov 0.0   ;;  %vm2093_vm1 = vmmov 0   ;;  %s1199_s19 = sld [smem:[#allocation3]] }
  0x4f   : > { %v1949_v14 = vld [vmem:[%s2226_s29 + $0x60] ss:$20 sps:$4 sm:$0xff]   ;;  %348 = vperm.xlu0 %1924, %v274_v15   ;;  %v1954_v22 = vld [vmem:[%s2226_s29 + $0x10] ss:$20 sps:$4 sm:$0xff]   ;;  %s2386_s16 = scalar_lea.vmem [#allocation7], %s1869_s15  ;;  %s1211_s10 = smul.u32 640, %s2150_s26 }
  0x50   : > { %v272_v16 = vld [vmem:[%s2960_s3 + $0x60] sm:$0xff]  ;;  %v275_v18 = vld [vmem:[%s2960_s3 + $0x78] sm:$0xff]  ;;  %v273_v19 = vld [vmem:[%s2960_s3 + $0x68] sm:$0xff]  ;;  %1640 = vst [vmem:[%s2386_s16] sm:$0xc0] %v2965_v46  ;;  %s2663_s11 = sld [smem:[#allocation3 + $0x1]]  ;;  %s1660_s17 = sshll.u32 %s2386_s16, 4  ;;  %s1661_s17 = int_to_ptr.vmem [resolvable:$true] %s1660_s17 }
  0x51   : > { %512 = vmatpush1.bf16.msra.mxu0 %v1936_v7  ;;  %625 = vmatpush1.bf16.msra.mxu1 %v1937_v8  ;;  %v270_v21 = vld [vmem:[%s2960_s3 + $0x50] sm:$0xff]  ;;  %v271_v23 = vld [vmem:[%s2960_s3 + $0x58] sm:$0xff]  ;;  %v268_v24 = vld [vmem:[%s2960_s3 + $0x40] sm:$0xff]  ;;  %1641 = vst [vmem:[%s2386_s16 + $0x8] sm:$0xc0] %v2965_v46  ;;  %s2665_s12 = sld [smem:[#allocation3 + $0x2]]  ;;  %s2914_s27 = scalar_lea.hbm %s2962_s5, %s1211_s10 }
  0x52   : > { %513 = vmatprep.subr.bf16.mxu0 %v1938_v9  ;;  %626 = vmatprep.subr.bf16.mxu1 %v1940_v10  ;;  %v1946_v25 = vld [vmem:[%s2959_s2 + $0x10] sm:$0xff]   ;;  %v269_v26 = vld [vmem:[%s2960_s3 + $0x48] sm:$0xff]  ;;  %v267_v28 = vld [vmem:[%s2960_s3 + $0x38] sm:$0xff]  ;;  %1642 = vst [vmem:[%s2386_s16 + $0x10] sm:$0xc0] %v2965_v46  ;;  %s1646_s7 = scalar_lea.sflag [#allocation6], %s2222_s21 }
  0x53   : > { %338 = vperm.xlu1 %1925, %v272_v16   ;;  %353 = vperm.xlu0 %1924, %v275_v18   ;;  %v266_v27 = vld [vmem:[%s2960_s3 + $0x30] sm:$0xff]  ;;  %v264_v29 = vld [vmem:[%s2960_s3 + $0x20] sm:$0xff]  ;;  %v1947_v30 = vld [vmem:[%s2959_s2 + $0x18] sm:$0xff]   ;;  %1643 = vst [vmem:[%s2386_s16 + $0x18] sm:$0xc0] %v2965_v46  ;;  %s2018_s15 = scalar_lea.vmem %s1661_s17, 640 }
  0x54   : > { %v265_v31 = vld [vmem:[%s2960_s3 + $0x28] sm:$0xff]  ;;  %v262_v32 = vld [vmem:[%s2960_s3 + $0x10] sm:$0xff]  ;;  %v263_v33 = vld [vmem:[%s2960_s3 + $0x18] sm:$0xff]  ;;  %1644 = vst [vmem:[%s2386_s16 + $0x20] sm:$0xc0] %v2965_v46  ;;  %s1200_s30 = scvt.s32.f32 %s1199_s19  ;;  %p2019_p2 = scmp.ne.s32.totalorder %s1661_s17, %s2018_s15 }
  0x55   : > { %514 = vmatpush1.bf16.msra.mxu0 %v1942_v11  ;;  %627 = vmatpush1.bf16.msra.mxu1 %v1943_v12  ;;  %v260_v34 = vld [vmem:[%s2960_s3] sm:$0xff]  ;;  %v261_v36 = vld [vmem:[%s2960_s3 + $0x8] sm:$0xff]  ;;  %v1951_v38 = vld [vmem:[%s2959_s2 + $0x30] sm:$0xff]   ;;  %p3033_p3 = scmp.ne.s32.totalorder %s2976_s8, 0  ;;  %s2095_s26 = smov [#allocation7]  }
  0x56   : > { %1825 = vmatprep.subr.bf16.mxu0 %v1949_v14  ;;  %v1948_v35 = vld [vmem:[%s2959_s2 + $0x20] sm:$0xff]   ;;  %v1950_v37 = vld [vmem:[%s2959_s2 + $0x28] sm:$0xff]   ;;  %v1952_v39 = vld [vmem:[%s2959_s2 + $0x38] sm:$0xff]   ;;  %s1202_s13 = scvt.s32.f32 %s2663_s11  ;;  %s2022_s29 = sshll.u32 %s2095_s26, 4  ;;  %s2023_s29 = int_to_ptr.vmem [resolvable:$false] %s2022_s29 }
  0x57   : > { %343 = vperm.xlu1 %1925, %v273_v19   ;;  %328 = vperm.xlu0 %1924, %v270_v21   ;;  %s1204_s14 = scvt.s32.f32 %s2665_s12  ;;  %p2020_p4 = pnand %p2019_p2, %p3033_p3 }
  0x58   : > { %1758 = vmatmul.mubr.msk.bf16.vlgmr.msra.gmra.mxu0 %vm474_vm0, %v2251_v13  ;;  %1766 = vmatmul.mubr.msk.bf16.vlgmr.msra.gmra.mxu1 %vm474_vm0, %v2251_v13  ;;  %s2024_s18 = scalar_lea.vmem %s2023_s29, 1280  ;;  %p2025_p10 = scmp.lt.s32.totalorder %s1661_s17, %s2023_s29 }
  0x59   : > { %541 = vmatprep.mubr.bf16.mxu0 %v2091_v0  ;;  %654 = vmatprep.mubr.bf16.mxu1 %v2091_v0  ;;  %p2021_p9 = pneg %p2020_p4  ;;  %p2026_p12 = scmp.lt.s32.totalorder %s2024_s18, %s2018_s15 }
  0x5a   : > { %1826 = vmatpush3.bf16.msra.mxu0 %v1949_v14 }
  0x5b   : > { %1827 = vmatprep.subr.bf16.mxu0 %v1953_v20  ;;  %333 = vperm.xlu1 %1925, %v271_v23   ;;  %p2027_p13 = por %p2026_p12, %p2025_p10 }
  0x5c   : > { %318 = vperm.xlu0 %1924, %v268_v24  }
  0x5d   : > { %p2028_p1 = pnand %p2027_p13, %p2021_p9 }
  0x5e   : > { %1828 = vmatpush3.bf16.msra.mxu0 %v1953_v20 }
  0x5f   : > { %1829 = vmatprep.subr.bf16.mxu0 %v1954_v22  ;;  %323 = vperm.xlu1 %1925, %v269_v26  }
  0x60   : > { %1759 = vmatmul.mubr.msk.bf16.gmra.mxu0 %vm474_vm0, %v2269_v17  ;;  %1767 = vmatmul.mubr.msk.bf16.gmra.mxu1 %vm474_vm0, %v2269_v17 }
  0x61   : > { %551 = vmatprep.mubr.bf16.mxu0 %v2091_v0  ;;  %664 = vmatprep.mubr.bf16.mxu1 %v2091_v0 }
  0x62   : > { %1830 = vmatpush3.bf16.msra.mxu0 %v1954_v22  ;;  %308 = vperm.xlu0 %1924, %v266_v27  }
  0x63   : > { %313 = vperm.xlu1 %1925, %v267_v28  }
  0x66   : > { %298 = vperm.xlu0 %1924, %v264_v29  }
  0x67   : > { %303 = vperm.xlu1 %1925, %v265_v31  }
  0x68   : > { %1760 = vmatmul.mubr.msk.bf16.gmra.mxu0 %vm474_vm0, %v1946_v25  ;;  %1768 = vmatmul.mubr.msk.bf16.gmra.mxu1 %vm474_vm0, %v1946_v25 }
  0x69   : > { %561 = vmatprep.mubr.bf16.mxu0 %v2091_v0  ;;  %674 = vmatprep.mubr.bf16.mxu1 %v2091_v0 }
  0x6a   : > { %288 = vperm.xlu0 %1924, %v262_v32  }
  0x6b   : > { %293 = vperm.xlu1 %1925, %v263_v33  }
  0x6e   : > { %278 = vperm.xlu0 %1924, %v260_v34  }
  0x6f   : > { %283 = vperm.xlu1 %1925, %v261_v36  }
  0x70   : > { %1761 = vmatmul.mubr.msk.bf16.gmra.mxu0 %vm474_vm0, %v1947_v30  ;;  %1769 = vmatmul.mubr.msk.bf16.gmra.mxu1 %vm474_vm0, %v1947_v30 }
  0x71   : > { %571 = vmatprep.mubr.bf16.mxu0 %v2091_v0  ;;  %684 = vmatprep.mubr.bf16.mxu1 %v2091_v0 }
  0x78   : > { %1762 = vmatmul.mubr.msk.bf16.gmra.mxu0 %vm474_vm0, %v1948_v35  ;;  %1770 = vmatmul.mubr.msk.bf16.gmra.mxu1 %vm474_vm0, %v1948_v35 }
  0x79   : > { %581 = vmatprep.mubr.bf16.mxu0 %v2091_v0  ;;  %694 = vmatprep.mubr.bf16.mxu1 %v2091_v0 }
  0x80   : > { %1763 = vmatmul.mubr.msk.bf16.gmra.mxu0 %vm474_vm0, %v1950_v37  ;;  %1771 = vmatmul.mubr.msk.bf16.gmra.mxu1 %vm474_vm0, %v1950_v37 }
  0x81   : > { %591 = vmatprep.mubr.bf16.mxu0 %v2091_v0  ;;  %704 = vmatprep.mubr.bf16.mxu1 %v2091_v0 }
  0x88   : > { %1764 = vmatmul.mubr.msk.bf16.gmra.mxu0 %vm474_vm0, %v1951_v38  ;;  %1772 = vmatmul.mubr.msk.bf16.gmra.mxu1 %vm474_vm0, %v1951_v38 }
  0x89   : > { %601 = vmatprep.mubr.bf16.mxu0 %v2091_v0  ;;  %714 = vmatprep.mubr.bf16.mxu1 %v2091_v0 }
  0x90   : > { %1765 = vmatmul.mubr.msk.bf16.gmra.mxu0 %vm474_vm0, %v1952_v39  ;;  %1773 = vmatmul.mubr.msk.bf16.gmra.mxu1 %vm474_vm0, %v1952_v39 }
  0x91   : > { %1831 = vmatprep.mubr.msk.bf16.mxu0 %vm474_vm0, %v2251_v13  ;;  %982 = vmatprep.mubr.bf16.mxu1 %v2091_v0 }
  0x98   : > { %1832 = vmatmul.mubr.msk.bf16.vlgmr.msra.gmra.mxu0 %vm474_vm0, %v2269_v17 }
  0x99   : > { %1835 = vmatprep.mubr.msk.bf16.mxu0 %vm474_vm0, %v1946_v25 }
  0xa0   : > { %1836 = vmatmul.mubr.msk.bf16.gmra.mxu0 %vm474_vm0, %v1947_v30 }
  0xa1   : > { %1839 = vmatprep.mubr.msk.bf16.mxu0 %vm474_vm0, %v1948_v35 }
  0xa8   : > { %1840 = vmatmul.mubr.msk.bf16.gmra.mxu0 %vm474_vm0, %v1950_v37 }
  0xa9   : > { %1843 = vmatprep.mubr.msk.bf16.mxu0 %vm474_vm0, %v1951_v38 }
  0xb0   : > { %1844 = vmatmul.mubr.msk.bf16.gmra.mxu0 %vm474_vm0, %v1952_v39 }
  0xb1   : > { %1025 = vmatprep.mubr.bf16.mxu0 %v2091_v0 }
  0xca   : > { %v2373_v40 = vpop.permute.xlu0 %348 }
  0xcb   : > { %2981 = vst [vmem:[#allocation11_spill] sm:$0xff] %v2373_v40 }
  0xce   : > { %v2375_v41 = vpop.permute.xlu1 %338  ;;  %v2377_v42 = vpop.permute.xlu0 %353 }
  0xd2   : > { %v2379_v43 = vpop.permute.xlu1 %343  ;;  %v2381_v44 = vpop.permute.xlu0 %328 }
  0xd3   : > { %2982 = vst [vmem:[#allocation12_spill] sm:$0xff] %v2379_v43 }
  0xd6   : > { %v2383_v45 = vpop.permute.xlu1 %333 }
  0xd7   : > { %v2398_v47 = vpop.permute.xlu0 %318 }
  0xda   : > { %v2400_v48 = vpop.permute.xlu1 %323 }
  0xdd   : > { %v2402_v49 = vpop.permute.xlu0 %308 }
  0xde   : > { %v2404_v50 = vpop.permute.xlu1 %313 }
  0xe1   : > { %v2406_v51 = vpop.permute.xlu0 %298 }
  0xe2   : > { %v2408_v52 = vpop.permute.xlu1 %303 }
  0xe3   : > { %2983 = vst [vmem:[#allocation13_spill] sm:$0xff] %v2408_v52 }
  0xe5   : > { %v2410_v53 = vpop.permute.xlu0 %288 }
  0xe6   : > { %2984 = vst [vmem:[#allocation14_spill] sm:$0xff] %v2410_v53  ;;  %v2412_v54 = vpop.permute.xlu1 %293 }
  0xe7   : > { %2985 = vst [vmem:[#allocation15_spill] sm:$0xff] %v2412_v54 }
  0xe9   : > { %v2414_v55 = vpop.permute.xlu0 %278 }
  0xea   : > { %2986 = vst [vmem:[#allocation16_spill] sm:$0xff] %v2414_v55  ;;  %v2417_v59 = vpop.permute.xlu1 %283 }
  0xeb   : > { %2987 = vst [vmem:[#allocation17_spill] sm:$0xff] %v2417_v59 }
 0x118   : > { %v533_v56 = vpop.f32.mrf.mxu0  ;;  %v646_v57 = vpop.f32.mrf.mxu1 }
 0x119   : > { %v647_v58 = vadd.f32 %v646_v57, %v2414_v55  ;;  %v534_v60 = vadd.f32 %v533_v56, %v2414_v55 }
 0x11a   : > { %v535_v61 = vpop.f32.mrf.mxu0  ;;  %v648_v62 = vpop.f32.mrf.mxu1 }
 0x11b   : > { %v649_v63 = vadd.f32 %v648_v62, %v2414_v55  ;;  %v536_v0 = vadd.f32 %v535_v61, %v2414_v55  ;;  %v824_v3 = vmax.f32 %v647_v58, 0.0  ;;  %v822_v6 = vmax.f32 %v534_v60, 0.0 }
 0x11c   : > { %v537_v1 = vpop.f32.mrf.mxu0  ;;  %v650_v2 = vpop.f32.mrf.mxu1 }
 0x11d   : > { %v538_v4 = vadd.f32 %v537_v1, %v2417_v59  ;;  %v651_v5 = vadd.f32 %v650_v2, %v2417_v59  ;;  %v825_v7 = vmax.f32 %v649_v63, 0.0  ;;  %v823_v14 = vmax.f32 %v536_v0, 0.0 }
 0x11e   : > { %v539_v8 = vpop.f32.mrf.mxu0  ;;  %v652_v9 = vpop.f32.mrf.mxu1 }
 0x11f   : > { %v827_v10 = vmax.f32 %v538_v4, 0.0  ;;  %v829_v11 = vmax.f32 %v651_v5, 0.0  ;;  %v540_v12 = vadd.f32 %v539_v8, %v2417_v59  ;;  %v653_v13 = vadd.f32 %v652_v9, %v2417_v59 }
 0x120   : > { %v543_v15 = vpop.f32.mrf.mxu0  ;;  %v656_v16 = vpop.f32.mrf.mxu1 }
 0x121   : > { %v2426_v17 = vpack.c.bf16 %v827_v10, %v822_v6  ;;  %v2428_v18 = vpack.c.bf16 %v829_v11, %v824_v3  ;;  %v828_v19 = vmax.f32 %v540_v12, 0.0  ;;  %v830_v20 = vmax.f32 %v653_v13, 0.0 }
 0x122   : > { %v544_v21 = vadd.f32 %v543_v15, %v2410_v53  ;;  %v657_v22 = vadd.f32 %v656_v16, %v2410_v53  ;;  %v545_v23 = vpop.f32.mrf.mxu0  ;;  %v658_v24 = vpop.f32.mrf.mxu1 }
 0x123   : > { %2988 = vst [vmem:[#allocation18_spill] sm:$0xff] %v2426_v17  ;;  %2989 = vst [vmem:[#allocation19_spill] sm:$0xff] %v2428_v18  ;;  %v2432_v25 = vpack.c.bf16 %v828_v19, %v823_v14  ;;  %v2434_v26 = vpack.c.bf16 %v830_v20, %v825_v7  ;;  %v659_v27 = vadd.f32 %v658_v24, %v2410_v53 }
 0x124   : > { %v546_v28 = vadd.f32 %v545_v23, %v2410_v53  ;;  %v547_v29 = vpop.f32.mrf.mxu0  ;;  %v660_v30 = vpop.f32.mrf.mxu1  ;;  %v834_v31 = vmax.f32 %v657_v22, 0.0  ;;  %v832_v34 = vmax.f32 %v544_v21, 0.0 }
 0x125   : > { %2990 = vst [vmem:[#allocation20_spill] sm:$0xff] %v2432_v25  ;;  %2991 = vst [vmem:[#allocation21_spill] sm:$0xff] %v2434_v26  ;;  %v548_v32 = vadd.f32 %v547_v29, %v2412_v54  ;;  %v661_v33 = vadd.f32 %v660_v30, %v2412_v54  ;;  %v835_v35 = vmax.f32 %v659_v27, 0.0 }
 0x126   : > { %v549_v36 = vpop.f32.mrf.mxu0  ;;  %v662_v37 = vpop.f32.mrf.mxu1  ;;  %v833_v58 = vmax.f32 %v546_v28, 0.0 }
 0x127   : > { %v837_v38 = vmax.f32 %v548_v32, 0.0  ;;  %v839_v39 = vmax.f32 %v661_v33, 0.0  ;;  %v550_v56 = vadd.f32 %v549_v36, %v2412_v54  ;;  %v663_v57 = vadd.f32 %v662_v37, %v2412_v54 }
 0x128   : > { %v2442_v60 = vpop.f32.mrf.mxu0  ;;  %v666_v61 = vpop.f32.mrf.mxu1 }
 0x129   : > { %2992 = vst [vmem:[#allocation22_spill] sm:$0xff] %v2442_v60  ;;  %v2444_v62 = vpack.c.bf16 %v837_v38, %v832_v34  ;;  %v2446_v63 = vpack.c.bf16 %v839_v39, %v834_v31  ;;  %v838_v0 = vmax.f32 %v550_v56, 0.0  ;;  %v840_v1 = vmax.f32 %v663_v57, 0.0 }
 0x12a   : > { %v2448_v2 = vpop.f32.mrf.mxu0  ;;  %v668_v3 = vpop.f32.mrf.mxu1  ;;  %v2479_v55 = vadd.f32 %v666_v61, %v2406_v51 }
 0x12b   : > { %2993 = vst [vmem:[#allocation23_spill] sm:$0xff] %v2444_v62  ;;  %2994 = vst [vmem:[#allocation24_spill] sm:$0xff] %v2446_v63  ;;  %v2450_v4 = vpack.c.bf16 %v838_v0, %v833_v58  ;;  %v2452_v5 = vpack.c.bf16 %v840_v1, %v835_v35  ;;  %v2482_v59 = vadd.f32 %v668_v3, %v2406_v51 }
 0x12c   : > { %v2454_v6 = vpop.f32.mrf.mxu0  ;;  %v2456_v7 = vpop.f32.mrf.mxu1  ;;  %3000 = vst [vmem:[#allocation30_spill] sm:$0xff] %v2479_v55 }
 0x12d   : > { %2995 = vst [vmem:[#allocation25_spill] sm:$0xff] %v2450_v4  ;;  %2996 = vst [vmem:[#allocation26_spill] sm:$0xff] %v2452_v5 }
 0x12e   : > { %2997 = vst [vmem:[#allocation27_spill] sm:$0xff] %v2454_v6  ;;  %2998 = vst [vmem:[#allocation28_spill] sm:$0xff] %v2456_v7  ;;  %v559_v8 = vpop.f32.mrf.mxu0  ;;  %v672_v9 = vpop.f32.mrf.mxu1 }
 0x12f   : > { %v2488_v54 = vadd.f32 %v559_v8, %v2408_v52  ;;  %v2491_v18 = vadd.f32 %v672_v9, %v2408_v52 }
 0x130   : > { %v2458_v10 = vpop.f32.mrf.mxu0  ;;  %v676_v11 = vpop.f32.mrf.mxu1 }
 0x131   : > { %2999 = vst [vmem:[#allocation29_spill] sm:$0xff] %v2458_v10  ;;  %3001 = vst [vmem:[#allocation31_spill] sm:$0xff] %v2488_v54  ;;  %v2494_v17 = vadd.f32 %v676_v11, %v2402_v49 }
 0x132   : > { %v2460_v12 = vpop.f32.mrf.mxu0  ;;  %v678_v13 = vpop.f32.mrf.mxu1  ;;  %3002 = vst [vmem:[#allocation32_spill] sm:$0xff] %v2491_v18 }
 0x133   : > { %3003 = vst [vmem:[#allocation33_spill] sm:$0xff] %v2494_v17  ;;  %v2497_v26 = vadd.f32 %v678_v13, %v2402_v49 }
 0x134   : > { %v2462_v14 = vpop.f32.mrf.mxu0  ;;  %v2464_v15 = vpop.f32.mrf.mxu1 }
 0x136   : > { %v569_v16 = vpop.f32.mrf.mxu0  ;;  %v682_v19 = vpop.f32.mrf.mxu1 }
 0x137   : > { %v2500_v3 = vadd.f32 %v569_v16, %v2404_v50 }
 0x138   : > { %v2466_v20 = vpop.f32.mrf.mxu0  ;;  %v686_v21 = vpop.f32.mrf.mxu1 }
 0x139   : > { %v2506_v8 = vadd.f32 %v686_v21, %v2398_v47 }
 0x13a   : > { %v2468_v22 = vpop.f32.mrf.mxu0  ;;  %v688_v23 = vpop.f32.mrf.mxu1 }
 0x13b   : > { %v2509_v9 = vadd.f32 %v688_v23, %v2398_v47 }
 0x13c   : > { %v2470_v24 = vpop.f32.mrf.mxu0  ;;  %v2472_v27 = vpop.f32.mrf.mxu1 }
 0x13e   : > { %v579_v28 = vpop.f32.mrf.mxu0  ;;  %v692_v29 = vpop.f32.mrf.mxu1 }
 0x13f   : > { %v2512_v11 = vadd.f32 %v579_v28, %v2400_v48  ;;  %v2515_v13 = vadd.f32 %v692_v29, %v2400_v48 }
 0x140   : > { %v2474_v30 = vpop.f32.mrf.mxu0  ;;  %v696_v31 = vpop.f32.mrf.mxu1 }
 0x141   : > { %v2518_v63 = vadd.f32 %v696_v31, %v2381_v44 }
 0x142   : > { %v585_v32 = vpop.f32.mrf.mxu0  ;;  %v698_v33 = vpop.f32.mrf.mxu1 }
 0x143   : > { %v2485_v53 = vadd.f32 %v698_v33, %v2381_v44  ;;  %v2503_v33 = vadd.f32 %v682_v19, %v2404_v50  ;;  %v2522_v5 = vadd.f32 %v585_v32, %v2381_v44 }
 0x144   : > { %v587_v34 = vpop.f32.mrf.mxu0  ;;  %v2476_v35 = vpop.f32.mrf.mxu1 }
 0x145   : > { %v2526_v23 = vadd.f32 %v587_v34, %v2383_v45 }
 0x146   : > { %v589_v36 = vpop.f32.mrf.mxu0  ;;  %v702_v37 = vpop.f32.mrf.mxu1 }
 0x147   : > { %v2529_v28 = vadd.f32 %v589_v36, %v2383_v45  ;;  %v2532_v29 = vadd.f32 %v702_v37, %v2383_v45 }
 0x148   : > { %v593_v38 = vpop.f32.mrf.mxu0  ;;  %v706_v39 = vpop.f32.mrf.mxu1 }
 0x149   : > { %v2535_v31 = vadd.f32 %v706_v39, %v2375_v41 }
 0x14a   : > { %v595_v56 = vpop.f32.mrf.mxu0  ;;  %v708_v57 = vpop.f32.mrf.mxu1 }
 0x14b   : > { %v709_v16 = vadd.f32 %v708_v57, %v2375_v41  ;;  %v596_v37 = vadd.f32 %v595_v56, %v2375_v41 }
 0x14c   : > { %v597_v58 = vpop.f32.mrf.mxu0  ;;  %v710_v0 = vpop.f32.mrf.mxu1 }
 0x14d   : > { %v885_v18 = vmax.f32 %v709_v16, 0.0  ;;  %v711_v7 = vadd.f32 %v710_v0, %v2379_v43 }
 0x14e   : > { %v599_v1 = vpop.f32.mrf.mxu0  ;;  %v712_v46 = vpop.f32.mrf.mxu1 }
 0x14f   : > { %v600_v57 = vadd.f32 %v599_v1, %v2379_v43  ;;  %v713_v4 = vadd.f32 %v712_v46, %v2379_v43  ;;  %v598_v46 = vadd.f32 %v597_v58, %v2379_v43  ;;  %v594_v58 = vadd.f32 %v593_v38, %v2375_v41 }
 0x150   : > { %v603_v61 = vpop.f32.mrf.mxu0  ;;  %v716_v25 = vpop.f32.mrf.mxu1 }
 0x151   : > { %v604_v39 = vadd.f32 %v603_v61, %v2373_v40  ;;  %v717_v54 = vadd.f32 %v716_v25, %v2373_v40  ;;  %v890_v6 = vmax.f32 %v713_v4, 0.0  ;;  %v883_v4 = vmax.f32 %v596_v37, 0.0 }
 0x152   : > { %v605_v62 = vpop.f32.mrf.mxu0  ;;  %v718_v19 = vpop.f32.mrf.mxu1 }
 0x153   : > { %v606_v21 = vadd.f32 %v605_v62, %v2373_v40  ;;  %v719_v34 = vadd.f32 %v718_v19, %v2373_v40  ;;  %v701_v40 = vadd.f32 %v2476_v35, %v2383_v45  ;;  %v892_v0 = vmax.f32 %v604_v39, 0.0 }
 0x154   : > { %v607_v32 = vpop.f32.mrf.mxu0  ;;  %v720_v55 = vpop.f32.mrf.mxu1  ;;  %v894_v43 = vmax.f32 %v717_v54, 0.0  ;;  %v880_v35 = vmax.f32 %v2532_v29, 0.0  ;;  %v937_v39 = vpack.c.bf16 %v890_v6, %v885_v18  ;;  %v576_v54 = vadd.f32 %v2468_v22, %v2398_v47 }
 0x155   : > { %v608_v60 = vadd.f32 %v607_v32, %v2377_v42  ;;  %v721_v36 = vadd.f32 %v720_v55, %v2377_v42  ;;  %v888_v32 = vmax.f32 %v600_v57, 0.0  ;;  %v893_v16 = vmax.f32 %v606_v21, 0.0 }
 0x156   : > { %v609_v1 = vpop.f32.mrf.mxu0  ;;  %v722_v17 = vpop.f32.mrf.mxu1  ;;  %v895_v61 = vmax.f32 %v719_v34, 0.0  ;;  %v691_v18 = vadd.f32 %v2472_v27, %v2400_v48  ;;  %v874_v6 = vmax.f32 %v2518_v63, 0.0  ;;  %v873_v22 = vmax.f32 %v2522_v5, 0.0 }
 0x157   : > { %v610_v62 = vadd.f32 %v609_v1, %v2377_v42  ;;  %v723_v19 = vadd.f32 %v722_v17, %v2377_v42  ;;  %v897_v55 = vmax.f32 %v608_v60, 0.0  ;;  %v899_v52 = vmax.f32 %v721_v36, 0.0 }
 0x158   : > { %v2550_v56 = vpop.f32.mrf.mxu0  ;;  %v884_v17 = vmax.f32 %v2535_v31, 0.0  ;;  %v887_v36 = vmax.f32 %v598_v46, 0.0  ;;  %v935_v38 = vpack.c.bf16 %v888_v32, %v883_v4  ;;  %v882_v31 = vmax.f32 %v594_v58, 0.0  ;;  %v3006_v4 = vld [vmem:[#allocation29_spill] sm:$0xff] }
 0x159   : > { %3004 = vst [vmem:[#allocation34_spill] sm:$0xff] %v2550_v56  ;;  %v898_v10 = vmax.f32 %v610_v62, 0.0  ;;  %v900_v25 = vmax.f32 %v723_v19, 0.0  ;;  %v889_v56 = vmax.f32 %v711_v7, 0.0  ;;  %v939_v21 = vpack.c.bf16 %v897_v55, %v892_v0 }
 0x15a   : > { %v2555_v1 = vpop.f32.mrf.mxu0  ;;  %v941_v34 = vpack.c.bf16 %v899_v52, %v894_v43  ;;  %v878_v19 = vmax.f32 %v2529_v28, 0.0  ;;  %v584_v7 = vadd.f32 %v2474_v30, %v2381_v44  ;;  %v578_v52 = vadd.f32 %v2470_v24, %v2400_v48 }
 0x15b   : > { %v940_v60 = vpack.c.bf16 %v898_v10, %v893_v16  ;;  %v942_v57 = vpack.c.bf16 %v900_v25, %v895_v61  ;;  %v865_v10 = vmax.f32 %v2509_v9, 0.0  ;;  %v877_v9 = vmax.f32 %v2526_v23, 0.0 }
 0x15c   : > { %v2558_v62 = vpop.f32.mrf.mxu0  ;;  %v879_v30 = vmax.f32 %v701_v40, 0.0  ;;  %v934_v28 = vpack.c.bf16 %v887_v36, %v882_v31  ;;  %v936_v29 = vpack.c.bf16 %v889_v56, %v884_v17  ;;  %v868_v46 = vmax.f32 %v2512_v11, 0.0  ;;  %v3011_v31 = vld [vmem:[#allocation31_spill] sm:$0xff] }
 0x15d   : > { %950 = vmatprep.subr.bf16.mxu1 %v940_v60  ;;  %993 = vmatprep.subr.bf16.mxu0 %v942_v57  ;;  %v870_v24 = vmax.f32 %v2515_v13, 0.0  ;;  %v930_v32 = vpack.c.bf16 %v878_v19, %v873_v22  ;;  %v3005_v27 = vmax.f32 %v2485_v53, 0.0  ;;  %v566_v63 = vadd.f32 %v2460_v12, %v2402_v49 }
 0x15e   : > { %v2567_v43 = vpop.f32.mrf.mxu0  ;;  %951 = vmatpush1.bf16.msra.mxu1 %v939_v21  ;;  %994 = vmatpush1.bf16.msra.mxu0 %v941_v34  ;;  %v855_v5 = vmax.f32 %v2497_v26, 0.0  ;;  %v574_v40 = vadd.f32 %v2466_v20, %v2398_v47  ;;  %v872_v23 = vmax.f32 %v584_v7, 0.0  ;;  %v568_v11 = vadd.f32 %v2462_v14, %v2404_v50  ;;  %v3007_v21 = vld [vmem:[#allocation13_spill] sm:$0xff]  ;;  %v3008_v34 = vld [vmem:[#allocation27_spill] sm:$0xff] }
 0x15f   : > { %952 = vmatprep.subr.bf16.mxu1 %v935_v38  ;;  %995 = vmatprep.subr.bf16.mxu0 %v937_v39  ;;  %v932_v55 = vpack.c.bf16 %v880_v35, %v3005_v27  ;;  %v681_v53 = vadd.f32 %v2464_v15, %v2404_v50  ;;  %v864_v13 = vmax.f32 %v2506_v8, 0.0  ;;  %v863_v16 = vmax.f32 %v576_v54, 0.0  ;;  %v3010_v35 = vld [vmem:[#allocation33_spill] sm:$0xff] }
 0x160   : > { %v2576_v37 = vpop.f32.mrf.mxu0  ;;  %v867_v26 = vmax.f32 %v578_v52, 0.0  ;;  %v869_v12 = vmax.f32 %v691_v18, 0.0  ;;  %v929_v61 = vpack.c.bf16 %v877_v9, %v872_v23  ;;  %v931_v20 = vpack.c.bf16 %v879_v30, %v874_v6  ;;  %v3012_v18 = vld [vmem:[#allocation32_spill] sm:$0xff]  ;;  %v3013_v30 = vld [vmem:[#allocation22_spill] sm:$0xff] }
 0x161   : > { %v858_v58 = vmax.f32 %v2500_v3, 0.0  ;;  %v860_v0 = vmax.f32 %v2503_v33, 0.0  ;;  %v925_v17 = vpack.c.bf16 %v868_v46, %v863_v16  ;;  %v927_v14 = vpack.c.bf16 %v870_v24, %v865_v10  ;;  %v3009_v33 = vld [vmem:[#allocation28_spill] sm:$0xff]  ;;  %v3014_v24 = vld [vmem:[#allocation30_spill] sm:$0xff] }
 0x162   : > { %v2587_v56 = vpop.f32.mrf.mxu0  ;;  %953 = vmatpush1.bf16.msra.mxu1 %v934_v28  ;;  %996 = vmatpush1.bf16.msra.mxu0 %v936_v29  ;;  %v556_v15 = vadd.f32 %v2448_v2, %v2406_v51  ;;  %v845_v8 = vmax.f32 %v2482_v59, 0.0  ;;  %v564_v60 = vadd.f32 %v3006_v4, %v2402_v49  ;;  %v862_v57 = vmax.f32 %v574_v40, 0.0 }
 0x163   : > { %954 = vmatprep.subr.bf16.mxu1 %v930_v32  ;;  %997 = vmatprep.subr.bf16.mxu0 %v932_v55  ;;  %v558_v3 = vadd.f32 %v3008_v34, %v3007_v21  ;;  %v671_v19 = vadd.f32 %v3009_v33, %v3007_v21  ;;  %v854_v38 = vmax.f32 %v3010_v35, 0.0  ;;  %v853_v39 = vmax.f32 %v566_v63, 0.0  ;;  %v3020_v34 = vld [vmem:[#allocation20_spill] sm:$0xff] }
 0x164   : > { %v2594_v25 = vpop.f32.mrf.mxu0  ;;  %v857_v59 = vmax.f32 %v568_v11, 0.0  ;;  %v859_v2 = vmax.f32 %v681_v53, 0.0  ;;  %v924_v54 = vpack.c.bf16 %v867_v26, %v862_v57  ;;  %v926_v10 = vpack.c.bf16 %v869_v12, %v864_v13  ;;  %v3019_v57 = vld [vmem:[#allocation24_spill] sm:$0xff] }
 0x165   : > { %v848_v52 = vmax.f32 %v3011_v31, 0.0  ;;  %v850_v6 = vmax.f32 %v3012_v18, 0.0  ;;  %v920_v22 = vpack.c.bf16 %v858_v58, %v853_v39  ;;  %v922_v9 = vpack.c.bf16 %v860_v0, %v855_v5  ;;  %v3015_v58 = vld [vmem:[#allocation25_spill] sm:$0xff]  ;;  %v3016_v0 = vld [vmem:[#allocation26_spill] sm:$0xff] }
 0x166   : > { %v2603_v36 = vpop.f32.mrf.mxu0  ;;  %955 = vmatpush1.bf16.msra.mxu1 %v929_v61  ;;  %998 = vmatpush1.bf16.msra.mxu0 %v931_v20  ;;  %v554_v28 = vadd.f32 %v3013_v30, %v2406_v51  ;;  %v852_v29 = vmax.f32 %v564_v60, 0.0  ;;  %v844_v32 = vmax.f32 %v3014_v24, 0.0  ;;  %v843_v27 = vmax.f32 %v556_v15, 0.0  ;;  %v3017_v15 = vld [vmem:[#allocation11_spill] sm:$0xff] }
 0x167   : > { %956 = vmatprep.subr.bf16.mxu1 %v925_v17  ;;  %999 = vmatprep.subr.bf16.mxu0 %v927_v14  ;;  %v847_v55 = vmax.f32 %v558_v3, 0.0  ;;  %v849_v63 = vmax.f32 %v671_v19, 0.0  ;;  %v921_v23 = vpack.c.bf16 %v859_v2, %v854_v38  ;;  %v917_v13 = vpack.c.bf16 %v850_v6, %v845_v8  ;;  %v3018_v60 = vld [vmem:[#allocation23_spill] sm:$0xff]  ;;  %v3021_v3 = vld [vmem:[#allocation21_spill] sm:$0xff]  ;;  %v3022_v19 = vld [vmem:[#allocation12_spill] sm:$0xff] }
 0x168   : > { %v1841_v7 = vpop.f32.mrf.mxu0  ;;  %v919_v40 = vpack.c.bf16 %v857_v59, %v852_v29  ;;  %v915_v53 = vpack.c.bf16 %v848_v52, %v843_v27  ;;  %v842_v5 = vmax.f32 %v554_v28, 0.0  ;;  %v1955_v38 = vld [vmem:[%s2961_s4] sm:$0xff]   ;;  %v3023_v59 = vld [vmem:[#allocation18_spill] sm:$0xff]  ;;  %v784_v29 = vadd.f32 %v2576_v37, %v2402_v49 }
 0x169   : > { %v916_v12 = vpack.c.bf16 %v849_v63, %v844_v32  ;;  %v3024_v2 = vld [vmem:[#allocation19_spill] sm:$0xff]  ;;  %v800_v18 = vadd.f32 %v1841_v7, %v2381_v44  ;;  %v787_v44 = vadd.f32 %v2594_v25, %v2404_v50  ;;  %v779_v32 = vadd.f32 %v2603_v36, %v3007_v21  ;;  %v3028_v63 = vld [vmem:[#allocation34_spill] sm:$0xff]  ;;  %v3029_v21 = vld [vmem:[#allocation17_spill] sm:$0xff] }
 0x16a   : > { %v791_v46 = vpop.f32.mrf.mxu0  ;;  %957 = vmatpush1.bf16.msra.mxu1 %v924_v54  ;;  %1000 = vmatpush1.bf16.msra.mxu0 %v926_v10  ;;  %v914_v26 = vpack.c.bf16 %v847_v55, %v842_v5  ;;  %v3025_v54 = vmov 0.0   ;;  %v776_v27 = vadd.f32 %v2587_v56, %v2406_v51  ;;  %v3026_v50 = vld [vmem:[#allocation15_spill] sm:$0xff]  ;;  %v3027_v55 = vld [vmem:[#allocation14_spill] sm:$0xff] }
 0x16b   : > { %958 = vmatprep.subr.bf16.mxu1 %v920_v22  ;;  %1001 = vmatprep.subr.bf16.mxu0 %v922_v9  ;;  %v876_v30 = vmax.f32 %v800_v18, 0.0  ;;  %v771_v25 = vadd.f32 %v2558_v62, %v3026_v50  ;;  %v851_v37 = vmax.f32 %v779_v32, 0.0 }
 0x16c   : > { %v1842_v11 = vpop.f32.mrf.mxu0 }
 0x16d   : > { %v803_v10 = vadd.f32 %v1842_v11, %v2383_v45  ;;  %v792_v45 = vadd.f32 %v791_v46, %v2398_v47  ;;  %v856_v46 = vmax.f32 %v784_v29, 0.0  ;;  %v841_v36 = vmax.f32 %v771_v25, 0.0 }
 0x16e   : > { %v794_v16 = vpop.f32.mrf.mxu0  ;;  %959 = vmatpush1.bf16.msra.mxu1 %v919_v40  ;;  %1002 = vmatpush1.bf16.msra.mxu0 %v921_v23  ;;  %v768_v40 = vadd.f32 %v3028_v63, %v3027_v55  ;;  %v846_v23 = vmax.f32 %v776_v27, 0.0  ;;  %v763_v11 = vadd.f32 %v2567_v43, %v3029_v21  ;;  %v1107_v43 = vlaneseq }
 0x16f   : > { %960 = vmatprep.subr.bf16.mxu1 %v915_v53  ;;  %1003 = vmatprep.subr.bf16.mxu0 %v917_v13  ;;  %v795_v22 = vadd.f32 %v794_v16, %v2400_v48  ;;  %v866_v24 = vmax.f32 %v792_v45, 0.0  ;;  %v861_v48 = vmax.f32 %v787_v44, 0.0  ;;  %v3030_v53 = vld [vmem:[#allocation16_spill] sm:$0xff]  ;;  %v2094_v45 = vmov 1966171168  }
 0x170   : > { %v1845_v61 = vpop.f32.mrf.mxu0  ;;  %v918_v51 = vpack.c.bf16 %v851_v37, %v846_v23  ;;  %v836_v56 = vmax.f32 %v768_v40, 0.0  ;;  %v760_v13 = vadd.f32 %v2555_v1, %v3030_v53  ;;  %v831_v5 = vmax.f32 %v763_v11, 0.0 }
 0x171   : > { %v816_v8 = vadd.f32 %v1845_v61, %v3017_v15  ;;  %v871_v28 = vmax.f32 %v795_v22, 0.0  ;;  %v923_v49 = vpack.c.bf16 %v861_v48, %v856_v46  ;;  %v1206_v1 = vand.u32 127, %v1107_v43 }
 0x172   : > { %v807_v20 = vpop.f32.mrf.mxu0  ;;  %961 = vmatpush1.bf16.msra.mxu1 %v914_v26  ;;  %1004 = vmatpush1.bf16.msra.mxu0 %v916_v12  ;;  %v913_v62 = vpack.c.bf16 %v841_v36, %v836_v56  ;;  %v826_v16 = vmax.f32 %v760_v13, 0.0  ;;  %v1228_v12 = vstv %s1200_s30  ;;  %v1212_v61 = vstv %s1211_s10 }
 0x173   : > { %962 = vmatprep.subr.bf16.mxu1 %v3015_v58  ;;  %1005 = vmatprep.subr.bf16.mxu0 %v3016_v0  ;;  %v896_v39 = vmax.f32 %v816_v8, 0.0  ;;  %v928_v47 = vpack.c.bf16 %v871_v28, %v866_v24  ;;  %1956 = vrcp.f32 %v1228_v12  ;;  %v1213_v58 = vadd.s32 %v1212_v61, %v1206_v1 }
 0x174   : > { %v1846_v17 = vpop.f32.mrf.mxu0  ;;  %v908_v26 = vpack.c.bf16 %v831_v5, %v826_v16  ;;  %v1355_v44 = vunpack.c.l.s4 %v2094_v45  ;;  %v2694_v5 = vstv %s1204_s14 }
 0x175   : > { %v819_v14 = vadd.f32 %v1846_v17, %v2377_v42  ;;  %v808_v42 = vadd.f32 %v807_v20, %v2375_v41  ;;  %v881_v41 = vmax.f32 %v803_v10, 0.0  ;;  %v1207_v20 = vadd.s32 128, %v1206_v1 }
 0x176   : > { %v810_v4 = vpop.f32.mrf.mxu0  ;;  %963 = vmatpush1.bf16.msra.mxu1 %v3018_v60  ;;  %1006 = vmatpush1.bf16.msra.mxu0 %v3019_v57  ;;  %v1208_v17 = vadd.s32 256, %v1206_v1  ;;  %v1356_v46 = vunpack.c.0.s8 %v1355_v44 }
 0x177   : > { %964 = vmatprep.subr.bf16.mxu1 %v3020_v34  ;;  %1007 = vmatprep.subr.bf16.mxu0 %v3021_v3  ;;  %v901_v33 = vmax.f32 %v819_v14, 0.0  ;;  %v811_v35 = vadd.f32 %v810_v4, %v3022_v19  ;;  %v886_v6 = vmax.f32 %v808_v42, 0.0  ;;  %v933_v7 = vpack.c.bf16 %v881_v41, %v876_v30 }
 0x178   : > { %v1214_v0 = vadd.s32 %v1212_v61, %v1207_v20  ;;  %v1218_v14 = vcvt.s32.f32 %v1213_v58  ;;  %v1215_v8 = vadd.s32 %v1212_v61, %v1208_v17  ;;  %v1209_v4 = vadd.s32 384, %v1206_v1 }
 0x179   : > { %v943_v31 = vpack.c.bf16 %v901_v33, %v896_v39  ;;  %v891_v52 = vmax.f32 %v811_v35, 0.0  ;;  %v1210_v34 = vadd.s32 512, %v1206_v1 }
 0x17a   : > { %965 = vmatpush1.bf16.msra.mxu1 %v3023_v59  ;;  %1008 = vmatpush1.bf16.msra.mxu0 %v3024_v2  ;;  %v1219_v15 = vcvt.s32.f32 %v1214_v0  ;;  %v1223_v60 = vadd.f32 0.5, %v1218_v14  ;;  %v1220_v33 = vcvt.s32.f32 %v1215_v8  ;;  %v1216_v19 = vadd.s32 %v1212_v61, %v1209_v4 }
 0x17b   : > { %1847 = vmatprep.subr.bf16.mxu1 %v3025_v54  ;;  %v938_v9 = vpack.c.bf16 %v891_v52, %v886_v6 }
 0x17c   : > { %v1224_v3 = vadd.f32 0.5, %v1219_v15  ;;  %v1225_v42 = vadd.f32 0.5, %v1220_v33  ;;  %v1221_v59 = vcvt.s32.f32 %v1216_v19 }
 0x17d   : > { %983 = vmatmul.mubr.bf16.vlgmr.msra.gmra.mxu1 %v1955_v38  ;;  %1026 = vmatmul.mubr.bf16.vlgmr.msra.gmra.mxu0 %v1955_v38 }
 0x17e   : > { %1848 = vmatpush3.bf16.msra.mxu1 %v943_v31  ;;  %1863 = vmatprep.mubr.msk.bf16.mxu1 %vm2093_vm1, %v3025_v54  ;;  %v1226_v52 = vadd.f32 0.5, %v1221_v59 }
 0x17f   : > { %1849 = vmatprep.subr.bf16.mxu1 %v3025_v54 }
 0x180   : > { %v1957_v57 = vpop.eup %1956 }
 0x181   : > { %v1230_v35 = vmul.f32 %v1957_v57, %v1223_v60  ;;  %v1231_v39 = vmul.f32 %v1957_v57, %v1224_v3  ;;  %v1232_v31 = vmul.f32 %v1957_v57, %v1225_v42 }
 0x182   : > { %1850 = vmatpush3.bf16.msra.mxu1 %v938_v9  ;;  %v1233_v9 = vmul.f32 %v1957_v57, %v1226_v52 }
 0x183   : > { %1851 = vmatprep.subr.bf16.mxu1 %v3025_v54  ;;  %v1235_v2 = vfloor.f32 %v1230_v35  ;;  %v1236_v10 = vfloor.f32 %v1231_v39  ;;  %v1237_v22 = vfloor.f32 %v1232_v31 }
 0x184   : > { %v1238_v24 = vfloor.f32 %v1233_v9 }
 0x185   : > { %v1240_v18 = vmul.f32 %v1235_v2, %v1228_v12  ;;  %v1241_v41 = vmul.f32 %v1236_v10, %v1228_v12  ;;  %v1242_v29 = vmul.f32 %v1237_v22, %v1228_v12  ;;  %v1322_v32 = vadd.f32 1.0, %v1235_v2 }
 0x186   : > { %1852 = vmatpush3.bf16.msra.mxu1 %v933_v7  ;;  %v1243_v37 = vmul.f32 %v1238_v24, %v1228_v12  ;;  %v2674_v55 = vmul.f32 4.0, %v1235_v2  ;;  %v1323_v56 = vadd.f32 1.0, %v1236_v10  ;;  %v2696_v16 = vmul.f32 4.0, %v1236_v10 }
 0x187   : > { %1853 = vmatprep.subr.bf16.mxu1 %v3025_v54  ;;  %v1245_v30 = vsub.f32 %v1218_v14, %v1240_v18  ;;  %v1246_v28 = vsub.f32 %v1219_v15, %v1241_v41  ;;  %v2678_v40 = vmul.f32 4.0, %v1322_v32  ;;  %v1324_v58 = vadd.f32 1.0, %v1237_v22 }
 0x188   : > { %v1248_v0 = vsub.f32 %v1221_v59, %v1243_v37  ;;  %v2708_v8 = vmul.f32 4.0, %v1323_v56  ;;  %v2712_v60 = vmul.f32 4.0, %v1237_v22  ;;  %v1325_v59 = vadd.f32 1.0, %v1238_v24 }
 0x189   : > { %v1297_v48 = vadd.f32 1.0, %v1245_v30  ;;  %v1250_v50 = vmul.f32 4.0, %v1245_v30  ;;  %v1298_v25 = vadd.f32 1.0, %v1246_v28  ;;  %v2680_v23 = vmul.f32 4.0, %v1246_v28 }
 0x18a   : > { %1854 = vmatpush3.bf16.msra.mxu1 %v928_v47  ;;  %v2668_v47 = vshrl.u32 %v1107_v43, 7  ;;  %v2718_v39 = vmul.f32 4.0, %v1324_v58  ;;  %v1300_v42 = vadd.f32 1.0, %v1248_v0 }
 0x18b   : > { %1855 = vmatprep.subr.bf16.mxu1 %v3025_v54  ;;  %v2676_v63 = vmul.f32 4.0, %v1297_v48 }
 0x18c   : > { %v2685_v21 = vsub.s32 %v1356_v46, %v2668_v47  ;;  %v2726_v44 = vmul.f32 4.0, %v1300_v42 }
 0x18e   : > { %1856 = vmatpush3.bf16.msra.mxu1 %v923_v49  ;;  %v1247_v49 = vsub.f32 %v1220_v33, %v1242_v29 }
 0x18f   : > { %1857 = vmatprep.subr.bf16.mxu1 %v3025_v54 }
 0x190   : > { %v1299_v20 = vadd.f32 1.0, %v1247_v49  ;;  %v2710_v4 = vmul.f32 4.0, %v1247_v49 }
 0x192   : > { %1858 = vmatpush3.bf16.msra.mxu1 %v918_v51  ;;  %v2689_v51 = vstv %s1202_s13 }
 0x193   : > { %1859 = vmatprep.subr.bf16.mxu1 %v3025_v54 }
 0x196   : > { %1860 = vmatpush3.bf16.msra.mxu1 %v913_v62 }
 0x197   : > { %1861 = vmatprep.subr.bf16.mxu1 %v3025_v54 }
 0x19a   : > { %1862 = vmatpush3.bf16.msra.mxu1 %v908_v26 }
 0x19d   : > { %1864 = vmatmul.mubr.bf16.vlgmr.msra.gmra.mxu1 %v1955_v38  ;;  %v1217_v38 = vadd.s32 %v1212_v61, %v1210_v34  ;;  %v2702_v61 = vmul.f32 4.0, %v1298_v25 }
 0x19f   : > { %v1222_v54 = vcvt.s32.f32 %v1217_v38  ;;  %v2716_v38 = vmul.f32 4.0, %v1299_v20 }
 0x1a1   : > { %v1227_v6 = vadd.f32 0.5, %v1222_v54 }
 0x1a3   : > { %v1234_v7 = vmul.f32 %v1957_v57, %v1227_v6  ;;  %v2724_v6 = vmul.f32 4.0, %v1238_v24 }
 0x1a5   : > { %v2671_v27 = vfloor.f32 %v1234_v7  ;;  %v2728_v7 = vmul.f32 4.0, %v1325_v59 }
 0x1a7   : > { %v1244_v53 = vmul.f32 %v2671_v27, %v1228_v12  ;;  %v2733_v29 = vadd.f32 1.0, %v2671_v27 }
 0x1a9   : > { %v1249_v57 = vsub.f32 %v1222_v54, %v1244_v53  ;;  %v2722_v54 = vmul.f32 4.0, %v1248_v0  ;;  %v2741_v53 = vmul.f32 4.0, %v2671_v27 }
 0x1ab   : > { %v1301_v41 = vadd.f32 1.0, %v1249_v57  ;;  %v2730_v28 = vmul.f32 4.0, %v1249_v57 }
 0x23d   : > { %v2682_v36 = vpop.f32.mrf.mxu1  ;;  %v2687_v11 = vpop.f32.mrf.mxu0 }
 0x23e   : > { %v1077_v13 = vrot.slane %v2682_v36, 4  ;;  %v1089_v62 = vrot.slane %v2687_v11, 4 }
 0x23f   : > { %v2698_v26 = vpop.f32.mrf.mxu1  ;;  %v2700_v1 = vpop.f32.mrf.mxu0 }
 0x240   : > { %v1078_v17 = vmax.f32 %v2682_v36, %v1077_v13  ;;  %v1090_v12 = vmax.f32 %v2687_v11, %v1089_v62  ;;  %v1083_v14 = vrot.slane %v2698_v26, 4  ;;  %v1095_v15 = vrot.slane %v2700_v1, 4 }
 0x241   : > { %v988_v35 = vpop.f32.mrf.mxu1  ;;  %v1031_v24 = vpop.f32.mrf.mxu0  ;;  %v2743_v13 = vmul.f32 4.0, %v1301_v41 }
 0x242   : > { %v1079_v34 = vrot.slane %v1078_v17, 2  ;;  %v1091_v3 = vrot.slane %v1090_v12, 2  ;;  %v1084_v33 = vmax.f32 %v2698_v26, %v1083_v14  ;;  %v1096_v19 = vmax.f32 %v2700_v1, %v1095_v15 }
 0x243   : > { %v2720_v18 = vmul.f32 4.0, %v988_v35  ;;  %v990_v37 = vpop.f32.mrf.mxu1  ;;  %v2738_v56 = vmul.f32 4.0, %v1031_v24 }
 0x244   : > { %v1080_v2 = vmax.f32 %v1078_v17, %v1079_v34  ;;  %v1092_v10 = vmax.f32 %v1090_v12, %v1091_v3  ;;  %v1085_v31 = vrot.slane %v1084_v33, 2  ;;  %v1097_v52 = vrot.slane %v1096_v19, 2 }
 0x245   : > { %v2736_v49 = vadd.f32 %v2720_v18, %v1250_v50  ;;  %v1281_v27 = vadd.f32 %v2674_v55, %v2720_v18  ;;  %v1256_v15 = vmul.f32 4.0, %v990_v37  ;;  %v1307_v42 = vadd.f32 %v2676_v63, %v2720_v18 }
 0x246   : > { %v1081_v22 = vrot.slane %v1080_v2, 1  ;;  %v1093_v9 = vrot.slane %v1092_v10, 1  ;;  %v1086_v30 = vmax.f32 %v1084_v33, %v1085_v31  ;;  %v1098_v45 = vmax.f32 %v1096_v19, %v1097_v52 }
 0x247   : > { %v1332_v63 = vadd.f32 %v2678_v40, %v2720_v18  ;;  %v1312_v37 = vmax.f32 %v1307_v42, 0.0 }
 0x248   : > { %v1082_v48 = vmax.f32 %v1080_v2, %v1081_v22  ;;  %v1094_v32 = vmax.f32 %v1092_v10, %v1093_v9  ;;  %v1087_v46 = vrot.slane %v1086_v30, 1  ;;  %v1099_v25 = vrot.slane %v1098_v45, 1 }
 0x24a   : > { %vm1109_vm2 = vcmp.ge.f32.partialorder %v2682_v36, %v1082_v48  ;;  %v1783_v62 = vmul.f32 -1.442695, %v1082_v48  ;;  %vm1111_vm3 = vcmp.ge.f32.partialorder %v2687_v11, %v1094_v32  ;;  %v1785_v20 = vmul.f32 -1.442695, %v1094_v32 }
 0x24b   : > { %v1114_v58 = vsel %vm1109_vm2, %v2668_v47, 8  ;;  %v1116_v0 = vsel %vm1111_vm3, %v2668_v47, 8  ;;  %v1088_v50 = vmax.f32 %v1086_v30, %v1087_v46  ;;  %v1100_v17 = vmax.f32 %v1098_v45, %v1099_v25 }
 0x24c   : > { %v1119_v12 = vrot.slane %v1114_v58, 4  ;;  %v1137_v14 = vrot.slane %v1116_v0, 4  ;;  %1958 = vpow2.f32 %v1785_v20  ;;  %v1265_v30 = vmax.f32 %v2736_v49, 0.0 }
 0x24d   : > { %vm1110_vm4 = vcmp.ge.f32.partialorder %v2698_v26, %v1088_v50  ;;  %v1784_v36 = vmul.f32 -1.442695, %v1088_v50  ;;  %vm1112_vm5 = vcmp.ge.f32.partialorder %v2700_v1, %v1100_v17  ;;  %1960 = vpow2.f32 %v1783_v62 }
 0x24e   : > { %vm1120_vm6 = vcmp.lt.s32.totalorder %v1114_v58, %v1119_v12  ;;  %vm1138_vm7 = vcmp.lt.s32.totalorder %v1116_v0, %v1137_v14  ;;  %v1115_v11 = vsel %vm1110_vm4, %v2668_v47, 8  ;;  %v1117_v57 = vsel %vm1112_vm5, %v2668_v47, 8 }
 0x24f   : > { %v1121_v34 = vsel %vm1120_vm6, %v1114_v58, %v1119_v12  ;;  %v1139_v3 = vsel %vm1138_vm7, %v1116_v0, %v1137_v14  ;;  %v1128_v33 = vrot.slane %v1115_v11, 4  ;;  %v1146_v55 = vrot.slane %v1117_v57, 4 }
 0x250   : > { %v1122_v19 = vrot.slane %v1121_v34, 2  ;;  %v1140_v35 = vrot.slane %v1139_v3, 2  ;;  %1962 = vpow2.f32 %v1784_v36  ;;  %v1261_v26 = vadd.f32 %v1256_v15, %v2680_v23 }
 0x251   : > { %vm1129_vm8 = vcmp.lt.s32.totalorder %v1115_v11, %v1128_v33  ;;  %v1282_v1 = vadd.f32 %v2696_v16, %v1256_v15  ;;  %vm1147_vm11 = vcmp.lt.s32.totalorder %v1117_v57, %v1146_v55  ;;  %v1286_v23 = vmax.f32 %v1281_v27, 0.0 }
 0x252   : > { %vm1123_vm9 = vcmp.lt.s32.totalorder %v1121_v34, %v1122_v19  ;;  %vm1141_vm10 = vcmp.lt.s32.totalorder %v1139_v3, %v1140_v35  ;;  %v1130_v59 = vsel %vm1129_vm8, %v1115_v11, %v1128_v33  ;;  %v1148_v52 = vsel %vm1147_vm11, %v1117_v57, %v1146_v55 }
 0x253   : > { %v1124_v2 = vsel %vm1123_vm9, %v1121_v34, %v1122_v19  ;;  %v1142_v10 = vsel %vm1141_vm10, %v1139_v3, %v1140_v35  ;;  %v1131_v31 = vrot.slane %v1130_v59, 2  ;;  %v1149_v9 = vrot.slane %v1148_v52, 2 }
 0x254   : > { %v1125_v41 = vrot.slane %v1124_v2, 1  ;;  %v1143_v22 = vrot.slane %v1142_v10, 1  ;;  %v1266_v45 = vmax.f32 %v1261_v26, 0.0  ;;  %v1287_v48 = vmax.f32 %v1282_v1, 0.0 }
 0x255   : > { %vm1132_vm12 = vcmp.lt.s32.totalorder %v1130_v59, %v1131_v31  ;;  %vm1150_vm14 = vcmp.lt.s32.totalorder %v1148_v52, %v1149_v9  ;;  %v1308_v25 = vadd.f32 %v2702_v61, %v1256_v15  ;;  %v1337_v62 = vmax.f32 %v1332_v63, 0.0 }
 0x256   : > { %vm1126_vm13 = vcmp.lt.s32.totalorder %v1124_v2, %v1125_v41  ;;  %v1133_v16 = vsel %vm1132_vm12, %v1130_v59, %v1131_v31  ;;  %vm1144_vm15 = vcmp.lt.s32.totalorder %v1142_v10, %v1143_v22  ;;  %v1151_v46 = vsel %vm1150_vm14, %v1148_v52, %v1149_v9  ;;  %v1033_v9 = vpop.f32.mrf.mxu0 }
 0x257   : > { %v1134_v32 = vrot.slane %v1133_v16, 1  ;;  %v1152_v24 = vrot.slane %v1151_v46, 1  ;;  %v1272_v20 = vmin.f32 %v2689_v51, %v1266_v45  ;;  %v1127_v40 = vsel %vm1126_vm13, %v1124_v2, %v1125_v41 }
 0x258   : > { %v1786_v18 = vmul.f32 -1.442695, %v1100_v17  ;;  %v1271_v49 = vmin.f32 %v2689_v51, %v1265_v30  ;;  %v2765_v0 = vsel %vm1144_vm15, %v1142_v10, %v1143_v22  ;;  %v1293_v50 = vmin.f32 %v2694_v5, %v1287_v48 }
 0x259   : > { %vm1135_vm0 = vcmp.lt.s32.totalorder %v1133_v16, %v1134_v32  ;;  %v1959_v58 = vpop.eup %1958  ;;  %vm1153_vm1 = vcmp.lt.s32.totalorder %v1151_v46, %v1152_v24  ;;  %v1333_v12 = vadd.f32 %v2708_v8, %v1256_v15  ;;  %v1292_v61 = vmin.f32 %v2694_v5, %v1286_v23 }
 0x25a   : > { %v1136_v14 = vsel %vm1135_vm0, %v1133_v16, %v1134_v32  ;;  %v1313_v27 = vmax.f32 %v1308_v25, 0.0  ;;  %v2771_v36 = vmul.f32 4.0, %v2733_v29  ;;  %v1961_v11 = vpop.eup %1960  ;;  %v1181_v57 = vadd.f32 1.0, %v1959_v58 }
 0x25b   : > { %v2773_v17 = vsel %vm1153_vm1, %v1151_v46, %v1152_v24  ;;  %v2776_v34 = vmin.f32 %v2689_v51, %v1312_v37  ;;  %v1451_v3 = vcombine.low %v1271_v49, %v1272_v20  ;;  %v1194_v33 = vcvt.s32.f32 %v1127_v40 }
 0x25c   : > { %v1196_v19 = vcvt.s32.f32 %v2765_v0  ;;  %1964 = vpow2.f32 %v1786_v18  ;;  %v2780_v8 = vmin.f32 %v2694_v5, %v1337_v62  ;;  %v1195_v29 = vcvt.s32.f32 %v1136_v14 }
 0x25d   : > { %v2782_v15 = vpop.f32.mrf.mxu1  ;;  %v1963_v35 = vpop.eup %1962  ;;  %v1338_v55 = vmax.f32 %v1333_v12, 0.0  ;;  %v1499_v42 = vcombine.low %v1292_v61, %v1293_v50  ;;  %v1262_v26 = vadd.f32 %v2738_v56, %v2710_v4  ;;  %v2786_v1 = vadd.f32 1.0, %v1961_v11 }
 0x25e   : > { %v1197_v59 = vcvt.s32.f32 %v2773_v17  ;;  %v1318_v2 = vmin.f32 %v2689_v51, %v1313_v27  ;;  %v1283_v10 = vadd.f32 %v2712_v60, %v2738_v56  ;;  %1966 = vrcp.f32 %v1181_v57 }
 0x25f   : > { %v1865_v31 = vpop.f32.mrf.mxu1  ;;  %v2793_v52 = vrot.slane %v1451_v3, %v2685_v21  ;;  %v1267_v41 = vmax.f32 %v1262_v26, 0.0  ;;  %v1309_v22 = vadd.f32 %v2716_v38, %v2738_v56  ;;  %v2797_v4 = vadd.f32 1.0, %v1963_v35 }
 0x260   : > { %v1288_v63 = vmax.f32 %v1283_v10, 0.0  ;;  %v1334_v30 = vadd.f32 %v2718_v39, %v2738_v56  ;;  %v1101_v23 = vrot.slane %v2782_v15, 4  ;;  %v2802_v60 = vcombine.low %v1194_v33, %v1195_v29 }
 0x261   : > { %v1073_v45 = vpop.f32.mrf.mxu1  ;;  %v1343_v16 = vmin.f32 %v2694_v5, %v1338_v55  ;;  %v2806_v48 = vrot.slane %v1499_v42, %v2685_v21  ;;  %v1314_v32 = vmax.f32 %v1309_v22, 0.0  ;;  %v1548_v38 = vcombine.low %v2776_v34, %v1318_v2 }
 0x262   : > { %v1339_v46 = vmax.f32 %v1334_v30, 0.0  ;;  %v1102_v25 = vmax.f32 %v2782_v15, %v1101_v23  ;;  %v1258_v24 = vmul.f32 4.0, %v1033_v9  ;;  %v1273_v39 = vmin.f32 %v2689_v51, %v1267_v41 }
 0x263   : > { %v1866_v37 = vpop.f32.mrf.mxu1  ;;  %v1294_v56 = vmin.f32 %v2694_v5, %v1288_v63  ;;  %v1319_v62 = vmin.f32 %v2689_v51, %v1314_v32  ;;  %v1259_v20 = vmul.f32 4.0, %v1073_v45  ;;  %vm2825_vm2 = vcmp.lt.s32.totalorder %v1107_v43, 640 }
 0x264   : > { %v1344_v40 = vmin.f32 %v2694_v5, %v1339_v46  ;;  %v1103_v18 = vrot.slane %v1102_v25, 2  ;;  %v1263_v49 = vadd.f32 %v1258_v24, %v2722_v54  ;;  %v1284_v58 = vadd.f32 %v2724_v6, %v1258_v24 }
 0x265   : > { %v1310_v50 = vadd.f32 %v2726_v44, %v1258_v24  ;;  %v1335_v12 = vadd.f32 %v2728_v7, %v1258_v24  ;;  %v1264_v14 = vadd.f32 %v1259_v20, %v2730_v28  ;;  %v1285_v61 = vadd.f32 %v2741_v53, %v1259_v20 }
 0x266   : > { %v1104_v27 = vmax.f32 %v1102_v25, %v1103_v18  ;;  %v1268_v11 = vmax.f32 %v1263_v49, 0.0  ;;  %v1289_v57 = vmax.f32 %v1284_v58, 0.0  ;;  %v1311_v34 = vadd.f32 %v2743_v13, %v1259_v20 }
 0x267   : > { %v1315_v3 = vmax.f32 %v1310_v50, 0.0  ;;  %v1340_v33 = vmax.f32 %v1335_v12, 0.0  ;;  %v1269_v35 = vmax.f32 %v1264_v14, 0.0  ;;  %v1290_v29 = vmax.f32 %v1285_v61, 0.0 }
 0x268   : > { %v1596_v54 = vcombine.low %v2780_v8, %v1343_v16  ;;  %v1105_v6 = vrot.slane %v1104_v27, 1  ;;  %v1274_v44 = vmin.f32 %v2689_v51, %v1268_v11  ;;  %v1295_v7 = vmin.f32 %v2694_v5, %v1289_v57 }
 0x269   : > { %v1965_v55 = vpop.eup %1964  ;;  %v1556_v53 = vrot.slane %v1548_v38, %v2685_v21  ;;  %v1320_v13 = vmin.f32 %v2689_v51, %v1315_v3  ;;  %v1345_v42 = vmin.f32 %v2694_v5, %v1340_v33  ;;  %v1275_v26 = vmin.f32 %v2689_v51, %v1269_v35 }
 0x26a   : > { %v1106_v8 = vmax.f32 %v1104_v27, %v1105_v6  ;;  %v1452_v2 = vcombine.low %v1273_v39, %v1274_v44  ;;  %v1500_v10 = vcombine.low %v1294_v56, %v1295_v7  ;;  %v1316_v31 = vmax.f32 %v1311_v34, 0.0 }
 0x26b   : > { %v1549_v41 = vcombine.low %v1319_v62, %v1320_v13  ;;  %v1597_v22 = vcombine.low %v1344_v40, %v1345_v42  ;;  %v1296_v9 = vmin.f32 %v2694_v5, %v1290_v29  ;;  %v1336_v43 = vadd.f32 %v2771_v36, %v1259_v20  ;;  %v2835_v63 = vpop.eup %1966 }
 0x26c   : > { %vm1113_vm3 = vcmp.ge.f32.partialorder %v2782_v15, %v1106_v8  ;;  %v1787_v30 = vmul.f32 -1.442695, %v1106_v8  ;;  %v1466_v23 = vrot.slane %v1452_v2, %v2685_v21  ;;  %v1473_v45 = vrot.slane %v1275_v26, %v2685_v21 }
 0x26d   : > { %v1604_v16 = vrot.slane %v1596_v54, %v2685_v21  ;;  %v1118_v32 = vsel %vm1113_vm3, %v2668_v47, 8  ;;  %v1514_v38 = vrot.slane %v1500_v10, %v2685_v21  ;;  %v1563_v46 = vrot.slane %v1549_v41, %v2685_v21 }
 0x26e   : > { %v1182_v25 = vadd.f32 1.0, %v1965_v55  ;;  %v1155_v24 = vrot.slane %v1118_v32, 4  ;;  %1968 = vpow2.f32 %v1787_v30  ;;  %v1474_v36 = vcombine.low %v2793_v52, %v1466_v23 }
 0x26f   : > { %v1522_v15 = vcombine.high %v2806_v48, %v1514_v38  ;;  %v1611_v37 = vrot.slane %v1597_v22, %v2685_v21  ;;  %v1321_v39 = vmin.f32 %v2689_v51, %v1316_v31  ;;  %v1341_v56 = vmax.f32 %v1336_v43, 0.0 }
 0x270   : > { %vm1156_vm4 = vcmp.lt.s32.totalorder %v1118_v32, %v1155_v24  ;;  %v1481_v62 = vrot.slane %v1474_v36, %v2685_v21  ;;  %v1488_v47 = vrot.slane %v1473_v45, %v2685_v21  ;;  %v1521_v20 = vrot.slane %v1296_v9, %v2685_v21 }
 0x271   : > { %1970 = vrcp.f32 %v2797_v4  ;;  %v1404_v52 = vcombine.low %v1196_v19, %v1197_v59  ;;  %v1157_v48 = vsel %vm1156_vm4, %v1118_v32, %v1155_v24  ;;  %v1571_v40 = vcombine.low %v1556_v53, %v1563_v46 }
 0x272   : > { %1972 = vrcp.f32 %v1182_v25  ;;  %v1158_v51 = vrot.slane %v1157_v48, 2  ;;  %v1346_v18 = vmin.f32 %v2694_v5, %v1341_v56  ;;  %v1489_v49 = vcombine.low %v1481_v62, %v1488_v47 }
 0x273   : > { %1974 = vrcp.f32 %v2786_v1  ;;  %v1523_v58 = vcombine.high %v1521_v20, %v1521_v20  ;;  %v1570_v50 = vrot.slane %v1321_v39, %v2685_v21  ;;  %v1530_v4 = vrot.slane %v1522_v15, %v2685_v21 }
 0x274   : > { %vm1159_vm5 = vcmp.lt.s32.totalorder %v1157_v48, %v1158_v51  ;;  %v1619_v12 = vcombine.high %v1604_v16, %v1611_v37  ;;  %1792 = vst.msk [vmem:[%s2386_s16 + $0x2] ss:$8 sm:$0xf] %vm2825_vm2, %v1489_v49  ;;  %1793 = vst.msk [vmem:[%s2386_s16 + $0x2] ss:$8 sm:$0x10] %vm2825_vm2, %v1489_v49  ;;  %v1618_v0 = vrot.slane %v1346_v18, %v2685_v21 }
 0x275   : > { %v1160_v5 = vsel %vm1159_vm5, %v1157_v48, %v1158_v51  ;;  %v1578_v17 = vrot.slane %v1571_v40, %v2685_v21  ;;  %v1537_v19 = vrot.slane %v1523_v58, %v2685_v21  ;;  %v1585_v1 = vrot.slane %v1570_v50, %v2685_v21 }
 0x276   : > { %v1411_v59 = vrot.slane %v2802_v60, %v2685_v21  ;;  %v1418_v14 = vrot.slane %v1404_v52, %v2685_v21  ;;  %v1161_v61 = vrot.slane %v1160_v5, 1  ;;  %v1620_v27 = vcombine.high %v1618_v0, %v1618_v0 }
 0x277   : > { %v1538_v11 = vcombine.low %v1530_v4, %v1537_v19  ;;  %v1586_v57 = vcombine.high %v1578_v17, %v1585_v1  ;;  %v1627_v34 = vrot.slane %v1619_v12, %v2685_v21 }
 0x278   : > { %vm1162_vm6 = vcmp.lt.s32.totalorder %v1160_v5, %v1161_v61  ;;  %v1634_v3 = vrot.slane %v1620_v27, %v2685_v21  ;;  %v1426_v60 = vcombine.low %v1411_v59, %v1418_v14 }
 0x279   : > { %v1163_v33 = vsel %vm1162_vm6, %v1160_v5, %v1161_v61  ;;  %1794 = vst.msk [vmem:[%s2386_s16 + $0x3] ss:$8 sm:$0xf] %vm2825_vm2, %v1538_v11  ;;  %1795 = vst.msk [vmem:[%s2386_s16 + $0x3] ss:$8 sm:$0x10] %vm2825_vm2, %v1538_v11 }
 0x27a   : > { %1796 = vst.msk [vmem:[%s2386_s16 + $0x4] ss:$8 sm:$0xf] %vm2825_vm2, %v1586_v57  ;;  %1797 = vst.msk [vmem:[%s2386_s16 + $0x4] ss:$8 sm:$0x10] %vm2825_vm2, %v1586_v57  ;;  %v1198_v35 = vcvt.s32.f32 %v1163_v33  ;;  %v1635_v29 = vcombine.high %v1627_v34, %v1634_v3  ;;  %v1433_v55 = vrot.slane %v1426_v60, %v2685_v21 }
 0x27b   : > { %v1969_v54 = vpop.eup %1968 }
 0x27c   : > { %v1183_v6 = vadd.f32 1.0, %v1969_v54  ;;  %v1425_v44 = vrot.slane %v1198_v35, %v2685_v21  ;;  %1798 = vst.msk [vmem:[%s2386_s16 + $0x5] ss:$8 sm:$0xf] %vm2825_vm2, %v1635_v29 }
 0x27d   : > { %1799 = vst.msk [vmem:[%s2386_s16 + $0x5] ss:$8 sm:$0x10] %vm2825_vm2, %v1635_v29 }
 0x27e   : > { %v1971_v7 = vpop.eup %1970  ;;  %1976 = vrcp.f32 %v1183_v6  ;;  %v1440_v53 = vrot.slane %v1425_v44, %v2685_v21 }
 0x27f   : > { %v1973_v13 = vpop.eup %1972 }
 0x280   : > { %v1975_v42 = vpop.eup %1974  ;;  %v1441_v26 = vcombine.low %v1433_v55, %v1440_v53  ;;  %v1353_v2 = vcombine.low %v2835_v63, %v1973_v13 }
 0x281   : > { %v1352_v8 = vcombine.low %v1975_v42, %v1971_v7 }
 0x282   : > { %1790 = vst.msk [vmem:[%s2386_s16 + $0x1] ss:$8 sm:$0xf] %vm2825_vm2, %v1441_v26  ;;  %1791 = vst.msk [vmem:[%s2386_s16 + $0x1] ss:$8 sm:$0x10] %vm2825_vm2, %v1441_v26  ;;  %v1367_v31 = vrot.slane %v1353_v2, %v2685_v21 }
 0x283   : > { %v1360_v10 = vrot.slane %v1352_v8, %v2685_v21 }
 0x285   : > { %v1375_v41 = vcombine.low %v1360_v10, %v1367_v31 }
 0x287   : > { %v1382_v43 = vrot.slane %v1375_v41, %v2685_v21 }
 0x28b   : > { %v1977_v22 = vpop.eup %1976 }
 0x28c   : > { %v1374_v9 = vrot.slane %v1977_v22, %v2685_v21 }
 0x28e   : > { %v1389_v63 = vrot.slane %v1374_v9, %v2685_v21 }
 0x290   : > { %v1390_v30 = vcombine.low %v1382_v43, %v1389_v63 }
 0x292   : > { %1396 = vst.msk [vmem:[%s2386_s16] ss:$8 sm:$0xf] %vm2825_vm2, %v1390_v30  ;;  %1397 = vst.msk [vmem:[%s2386_s16] ss:$8 sm:$0x10] %vm2825_vm2, %v1390_v30 }
 0x293   : > { %2031 = shalt.err (!%p2028_p1)
}
 0x294   : > { %s2032_s16 = scalar_lea.hbm %s2914_s27, 640  ;;  %s2036_s30 = scalar_lea.hbm %s2962_s5, 1280 }
 0x295   : > { %p2033_p6 = scmp.ne.s32.totalorder %s2914_s27, %s2032_s16  ;;  %p2037_p5 = scmp.lt.s32.totalorder %s2914_s27, %s2962_s5 }
 0x296   : > { %p2038_p7 = scmp.lt.s32.totalorder %s2036_s30, %s2032_s16 }
 0x297   : > { %p2034_p8 = pnand %p2033_p6, %p3033_p3 }
 0x298   : > { %p2039_p11 = por %p2038_p7, %p2037_p5 }
 0x299   : > { %p2035_p0 = pneg %p2034_p8 }
 0x29b   : > { %p2040_p2 = pnand %p2039_p11, %p2035_p0 }
 0x29d   : > { %2043 = shalt.err (!%p2040_p2)
}
 0x29e   : > { %1872 = dma.vmem_to_hbm [thread:$0]  (%p3033_p3), %s1661_s17, 640, %s2914_s27, %s1646_s7  }
 0x29f PF: > { %s1672_s12 = sand.u32 1, %s2072_s23   ;;  %p3034_p4 = scmp.ne.s32.totalorder %s2977_s9, 0 }
 0x2a0   : > { %p3035_p9 = scmp.ge.s32.totalorder %s2084_s25, 2  ;;  %s1673_s13 = scalar_lea.sflag [#allocation6], %s1672_s12 }
 0x2a2   : > { %p1879_p10 = pnand %p3035_p9, %p3034_p4 }
 0x2a4   : > { %p1880_p12 = pneg %p1879_p10 }
 0x2a6   : > { %2067 = dma.done.wait (%p1880_p12), %s1673_s13, 640  }
 0x2a7   : > { %2069 = vsyncadd (%p1880_p12), %s1673_s13, 4294966656  ;;  %p24_p13 = scmp.ge.s32.totalorder %s2154_s28, 4   ;;  %s3036_s23 = smov %s2076_s0 }
 0x2a8   : > { %s3037_s0 = smov %s2080_s24  ;;  %s3038_s24 = smov %s2166_s6 }
 0x2a9   : > { %s3039_s25 = smov %s2154_s28  ;;  %26 = sbr.rel (!%p24_p13) target bundleno = 20 (0x14), region = 86 }
 0x2ae   :  { %1678 = vsyncpa [#allocation5], 1 }
 0x2af   :  { %1680 = vsyncpa [#allocation5 + $0x1], 1 }
 0x2b0   :  { %1681 = vsyncpa [#allocation6], 1 }
 0x2b1   :  { %1683 = vsyncpa [#allocation6 + $0x1], 1 }

</bundles_post_ra>
